<compile_context>
chip_gen: v5e
topology: v5e:2x2
jax: 0.10.0
libtpu: 0.0.40
codegen_flags: <defaults>
</compile_context>

<pallas_src>
import math
import functools

import jax
import jax.numpy as jnp
from jax.experimental import pallas as pl
from jax.experimental.pallas import tpu as pltpu

# ----------------------------- configuration -------------------------------
D_MODEL = 32
N_GLIMPSES = 10          # S (sequence length after zero-padding)
DIM_FF = 64
N_HEADS = 1
LN_EPS = 1e-5
NEG_INF = -1e30          # additive mask value (exp() underflows to exactly 0)
LANE = 128               # TPU lane width used for padding / packing


# ----------------------------- helpers (glue) -------------------------------
def positional_encoding(S, d, n=10000.0):
    pos = jnp.arange(S, dtype=jnp.float32)[:, None]
    denom = jnp.exp(jnp.arange(0, d, 2, dtype=jnp.float32) * (-math.log(n) / d))
    pe = jnp.zeros((S, d), jnp.float32)
    pe = pe.at[:, 0::2].set(jnp.sin(pos * denom))
    pe = pe.at[:, 1::2].set(jnp.cos(pos * denom))
    return pe[None]  # (1, S, d)


def _ln(x, w, b, eps):
    mu = jnp.mean(x, axis=-1, keepdims=True)
    var = jnp.mean((x - mu) ** 2, axis=-1, keepdims=True)
    return (x - mu) * jax.lax.rsqrt(var + eps) * w + b


# ------------------------- memory-branch kernel -----------------------------
def _mem_kernel(len_ref,                        # scalar prefetch (SMEM)
                x_ref, wpack_ref, woutp_ref, vec_ref,   # inputs
                h_ref, attn_ref,                # outputs
                flat_ref,                       # VMEM scratch (1, S*128)
                *, S, D, F):
    len_mem = len_ref[0]
    x = x_ref[0]                                                   # (S, D)

    # --- masks from the prefetched scalar (no HBM operands needed) ----------
    col = jax.lax.broadcasted_iota(jnp.int32, (S, S), 1)
    mask_add = jnp.where(col >= len_mem, NEG_INF, 0.0)             # (S, S) f32
    valid = (jax.lax.broadcasted_iota(jnp.int32, (S, 1), 0)
             < len_mem).astype(jnp.float32)                        # (S, 1)

    # --- unpack pre-transposed weights (stacked along sublanes) -------------
    wq = wpack_ref[0 * D:1 * D, 0:D]                               # (D, D)
    wk = wpack_ref[1 * D:2 * D, 0:D]
    wv = wpack_ref[2 * D:3 * D, 0:D]
    wo = wpack_ref[3 * D:4 * D, 0:D]
    w1 = wpack_ref[4 * D:5 * D, 0:F]                               # (D, F)
    w2 = wpack_ref[5 * D:5 * D + F, 0:D]                           # (F, D)

    bq = vec_ref[0:1, 0:D]
    bk = vec_ref[1:2, 0:D]
    bv = vec_ref[2:3, 0:D]
    bo = vec_ref[3:4, 0:D]
    n1w = vec_ref[4:5, 0:D]
    n1b = vec_ref[5:6, 0:D]
    n2w = vec_ref[6:7, 0:D]
    n2b = vec_ref[7:8, 0:D]
    b1 = vec_ref[8:9, 0:F]
    b2 = vec_ref[9:10, 0:D]
    outb = vec_ref[10:11, 0:D]

    # --- single-head self-attention (head_dim == D) --------------------------
    q = jnp.dot(x, wq, preferred_element_type=jnp.float32) + bq
    k = jnp.dot(x, wk, preferred_element_type=jnp.float32) + bk
    v = jnp.dot(x, wv, preferred_element_type=jnp.float32) + bv

    scale = 1.0 / math.sqrt(D)
    scores = jnp.dot(q, k.T, preferred_element_type=jnp.float32) * scale + mask_add
    m = jnp.max(scores, axis=-1, keepdims=True)
    e = jnp.exp(scores - m)
    attn = e * pl.reciprocal(jnp.sum(e, axis=-1, keepdims=True), approx=True)
    attn_ref[0, 0] = attn                                          # (S, S)

    ao = jnp.dot(attn, v, preferred_element_type=jnp.float32)
    ao = jnp.dot(ao, wo, preferred_element_type=jnp.float32) + bo

    # --- residual + norm1 ----------------------------------------------------
    z = _ln(x + ao, n1w, n1b, LN_EPS)

    # --- feed-forward block + residual + norm2 -------------------------------
    ff = jnp.maximum(jnp.dot(z, w1, preferred_element_type=jnp.float32) + b1, 0.0)
    ff = jnp.dot(ff, w2, preferred_element_type=jnp.float32) + b2
    z2 = _ln(z + ff, n2w, n2b, LN_EPS)

    # --- zero out padded glimpse slots ---------------------------------------
    z2 = z2 * valid                                                # (S, D)

    # --- out = Linear(S*D -> D) as ONE matmul --------------------------------
    # Flatten z2 row-by-row into a lane-tile-aligned scratch (1, S*128); the
    # matching out-weight is pre-padded to (S*128, D) in the wrapper.
    flat_ref[...] = jnp.zeros_like(flat_ref)
    for s in range(S):                               # 10 tile-aligned stores
        flat_ref[:, s * LANE:s * LANE + D] = z2[s:s + 1, :]
    h = jnp.dot(flat_ref[...], woutp_ref[...],
                preferred_element_type=jnp.float32) + outb          # (1, D)
    h_ref[0] = jnp.maximum(h, 0.0)                                  # F.relu(h_t)


def core_network_memory_forward(params, mem_list, n_glimpses=N_GLIMPSES):
    """use_memory=True branch. mem_list: python list of (B, d_model) glimpses."""
    B, D = mem_list[0].shape
    S = n_glimpses
    F = DIM_FF
    len_mem = len(mem_list)

    # glue: stack memory, add positional encoding, zero-pad to S glimpses
    x = jnp.stack(mem_list, axis=1)                                # (B, len, D)
    x = x + positional_encoding(S, D)[:, :len_mem]
    x = jnp.concatenate(
        [x, jnp.zeros((B, S - len_mem, D), jnp.float32)], axis=1)  # (B, S, D)

    # --- pack weights: pre-transposed, stacked along rows, lane-padded -------
    wq, wk, wv = jnp.split(params["in_proj_w"], 3, axis=0)         # (D, D) each

    def pad_lane(w):
        return jnp.pad(w, ((0, 0), (0, LANE - w.shape[1])))

    wpack = jnp.concatenate([
        pad_lane(wq.T), pad_lane(wk.T), pad_lane(wv.T),
        pad_lane(params["out_proj_w"].T),
        pad_lane(params["lin1_w"].T),                              # (D, F)
        pad_lane(params["lin2_w"].T),                              # (F, D)
    ], axis=0).astype(jnp.float32)                                 # (5D+F, 128)

    # out Linear weight (D_out, S*D) -> (S, D_in, D_out), pad D_in to 128 rows
    w3 = params["out_w"].reshape(D, S, D).transpose(1, 2, 0)       # (S, D, D)
    w3p = jnp.pad(w3, ((0, 0), (0, LANE - D), (0, 0)))             # (S, 128, D)
    wout_pad = w3p.reshape(S * LANE, D).astype(jnp.float32)        # (S*128, D)

    def row(v):
        v = v.reshape(1, -1)
        return jnp.pad(v, ((0, 0), (0, LANE - v.shape[1])))

    bq, bk, bv = jnp.split(params["in_proj_b"], 3)
    vecpack = jnp.concatenate([
        row(bq), row(bk), row(bv), row(params["out_proj_b"]),
        row(params["n1_w"]), row(params["n1_b"]),
        row(params["n2_w"]), row(params["n2_b"]),
        row(params["lin1_b"]), row(params["lin2_b"]), row(params["out_b"]),
    ], axis=0).astype(jnp.float32)                                 # (11, 128)

    len_arr = jnp.array([len_mem], jnp.int32)

    kern = functools.partial(_mem_kernel, S=S, D=D, F=F)

    grid_spec = pltpu.PrefetchScalarGridSpec(
        num_scalar_prefetch=1,
        grid=(B,),
        in_specs=[
            pl.BlockSpec((1, S, D), lambda b, L: (b, 0, 0)),       # x (per batch)
            pl.BlockSpec((5 * D + F, LANE), lambda b, L: (0, 0)),  # packed weights
            pl.BlockSpec((S * LANE, D), lambda b, L: (0, 0)),      # padded out weight
            pl.BlockSpec((11, LANE), lambda b, L: (0, 0)),         # packed vectors
        ],
        out_specs=(pl.BlockSpec((1, 1, D), lambda b, L: (b, 0, 0)),
                   pl.BlockSpec((1, N_HEADS, S, S), lambda b, L: (b, 0, 0, 0))),
        scratch_shapes=[pltpu.VMEM((1, S * LANE), jnp.float32)],
    )

    h_t, attn = pl.pallas_call(
        kern,
        out_shape=(jax.ShapeDtypeStruct((B, 1, D), jnp.float32),
                   jax.ShapeDtypeStruct((B, N_HEADS, S, S), jnp.float32)),
        grid_spec=grid_spec,
        compiler_params=pltpu.CompilerParams(dimension_semantics=("parallel",)),
    )(len_arr, x, wpack, wout_pad, vecpack)

    return h_t[:, 0, :], attn


# ----------------------- no-memory (recurrent) kernel ------------------------
def _nomem_kernel(gh_ref, w_ref, b_ref, out_ref):
    h = jnp.dot(gh_ref[...], w_ref[...],
                preferred_element_type=jnp.float32) + b_ref[...]
    out_ref[...] = jnp.maximum(h, 0.0)


def core_network_nomem_forward(params, g_t, h_t_prev):
    """use_memory=False branch: relu(g2h(g_t) + h2h(h_prev)), fused matmul."""
    B, D = g_t.shape
    gh = jnp.concatenate([g_t, h_t_prev], axis=1)                  # (B, 2D)
    w = jnp.concatenate([params["g2h_w"].T, params["h2h_w"].T], axis=0)  # (2D, D)
    b = (params["g2h_b"] + params["h2h_b"]).reshape(1, -1)         # (1, D)

    def full(shape):
        return pl.BlockSpec(shape, lambda i: (0,) * len(shape))

    return pl.pallas_call(
        _nomem_kernel,
        out_shape=jax.ShapeDtypeStruct((B, D), jnp.float32),
        grid=(1,),
        in_specs=[full((B, 2 * D)), full((2 * D, D)), full((1, D))],
        out_specs=full((B, D)),
    )(gh, w, b)


# ----------------------------- pure-JAX reference ----------------------------
def _reference_memory(params, mem_list, n_glimpses=N_GLIMPSES):
    B, D = mem_list[0].shape
    S = n_glimpses
    len_mem = len(mem_list)
    x = jnp.stack(mem_list, axis=1) + positional_encoding(S, D)[:, :len_mem]
    x = jnp.concatenate([x, jnp.zeros((B, S - len_mem, D))], axis=1)
    cols = jnp.arange(S)
    mask_add = jnp.where(cols[None, :] >= len_mem, NEG_INF, 0.0) * jnp.ones((S, 1))
    wq, wk, wv = jnp.split(params["in_proj_w"], 3, axis=0)
    bq, bk, bv = jnp.split(params["in_proj_b"], 3)
    q, k, v = x @ wq.T + bq, x @ wk.T + bk, x @ wv.T + bv
    scores = jnp.einsum("bqd,bkd->bqk", q, k) / math.sqrt(D) + mask_add
    attn = jax.nn.softmax(scores, axis=-1)
    ao = jnp.einsum("bqk,bkd->bqd", attn, v) @ params["out_proj_w"].T + params["out_proj_b"]
    z = _ln(x + ao, params["n1_w"], params["n1_b"], LN_EPS)
    ff = jnp.maximum(z @ params["lin1_w"].T + params["lin1_b"], 0.0)
    ff = ff @ params["lin2_w"].T + params["lin2_b"]
    z2 = _ln(z + ff, params["n2_w"], params["n2_b"], LN_EPS)
    z2 = z2 * (cols < len_mem)[None, :, None]
    h = z2.reshape(B, -1) @ params["out_w"].T + params["out_b"]
    return jnp.maximum(h, 0.0), attn[:, None]


def _reference_nomem(params, g_t, h_prev):
    h = g_t @ params["g2h_w"].T + params["g2h_b"] + h_prev @ params["h2h_w"].T + params["h2h_b"]
    return jnp.maximum(h, 0.0)


# ------------------------------------ main ------------------------------------
if __name__ == "__main__":
    key = jax.random.PRNGKey(0)
    ks = iter(jax.random.split(key, 32))

    def nrm(shape, scale=0.1):
        return scale * jax.random.normal(next(ks), shape, jnp.float32)

    B, D, S, F = 2, D_MODEL, N_GLIMPSES, DIM_FF

    mem_params = dict(
        in_proj_w=nrm((3 * D, D)), in_proj_b=nrm((3 * D,)),
        out_proj_w=nrm((D, D)), out_proj_b=nrm((D,)),
        n1_w=jnp.ones((D,)) + nrm((D,), 0.01), n1_b=nrm((D,), 0.01),
        n2_w=jnp.ones((D,)) + nrm((D,), 0.01), n2_b=nrm((D,), 0.01),
        lin1_w=nrm((F, D)), lin1_b=nrm((F,)),
        lin2_w=nrm((D, F)), lin2_b=nrm((D,)),
        out_w=nrm((D, D * S)), out_b=nrm((D,)),
    )
    nomem_params = dict(
        g2h_w=nrm((D, D)), g2h_b=nrm((D,)),
        h2h_w=nrm((D, D)), h2h_b=nrm((D,)),
    )

    # memory branch: 3 glimpses appended so far
    mem_list = [nrm((B, D), 1.0) for _ in range(3)]
    h_t, attn = core_network_memory_forward(mem_params, mem_list)
    jax.block_until_ready((h_t, attn))
    h_ref, attn_ref = _reference_memory(mem_params, mem_list)
    assert h_t.shape == (B, D) and attn.shape == (B, N_HEADS, S, S)
    assert jnp.allclose(h_t, h_ref, atol=1e-3, rtol=1e-3)
    assert jnp.allclose(attn, attn_ref, atol=1e-3, rtol=1e-3)

    # no-memory branch
    g_t = nrm((B, D), 1.0)
    h_prev = nrm((B, D), 1.0)
    h_simple = core_network_nomem_forward(nomem_params, g_t, h_prev)
    jax.block_until_ready(h_simple)
    assert jnp.allclose(h_simple, _reference_nomem(nomem_params, g_t, h_prev),
                        atol=1e-3, rtol=1e-3)

    print("KERNEL_OK")
</pallas_src>

<mosaic_0001>
module attributes {stable_mosaic.version = 11 : i64} {
  func.func @_mem_kernel(%arg0: i32, %arg1: memref<1xi32, #tpu.memory_space<smem>>, %arg2: memref<1x10x32xf32, #tpu.memory_space<vmem>>, %arg3: memref<224x128xf32, #tpu.memory_space<vmem>>, %arg4: memref<1280x32xf32, #tpu.memory_space<vmem>>, %arg5: memref<11x128xf32, #tpu.memory_space<vmem>>, %arg6: memref<1x1x32xf32, #tpu.memory_space<vmem>>, %arg7: memref<1x1x10x10xf32, #tpu.memory_space<vmem>>, %arg8: memref<1x1280xf32, #tpu.memory_space<vmem>>) attributes {dimension_semantics = [#tpu.dimension_semantics<parallel>], iteration_bounds = array<i64: 2>, scalar_prefetch = 1 : i64, scratch_operands = 1 : i64, tpu.core_type = #tpu.core_type<tc>, window_params = [{transform_indices = @transform_0, window_bounds = array<i64: 1, 10, 32>}, {pipeline_mode = #tpu.pipeline_mode<synchronous>, transform_indices = @transform_1, window_bounds = array<i64: 224, 128>}, {pipeline_mode = #tpu.pipeline_mode<synchronous>, transform_indices = @transform_2, window_bounds = array<i64: 1280, 32>}, {pipeline_mode = #tpu.pipeline_mode<synchronous>, transform_indices = @transform_3, window_bounds = array<i64: 11, 128>}, {transform_indices = @transform_4, window_bounds = array<i64: 1, 1, 32>}, {transform_indices = @transform_5, window_bounds = array<i64: 1, 1, 10, 10>}]} {
    %c0 = arith.constant 0 : index
    %0 = memref.load %arg1[%c0] : memref<1xi32, #tpu.memory_space<smem>>
    %c0_0 = arith.constant 0 : index
    %c0_1 = arith.constant 0 : index
    %c0_2 = arith.constant 0 : index
    %1 = vector.load %arg2[%c0_0, %c0_1, %c0_2] : memref<1x10x32xf32, #tpu.memory_space<vmem>>, vector<1x10x32xf32>
    %2 = vector.shape_cast %1 : vector<1x10x32xf32> to vector<10x32xf32>
    %3 = tpu.iota {dimensions = array<i32: 1>} : vector<10x10xi32>
    %4 = vector.broadcast %0 : i32 to vector<10x10xi32>
    %5 = arith.cmpi sge, %3, %4 : vector<10x10xi32>
    %cst = arith.constant -1.000000e+30 : f32
    %cst_3 = arith.constant 0.000000e+00 : f32
    %6 = vector.broadcast %cst : f32 to vector<10x10xf32>
    %7 = vector.broadcast %cst_3 : f32 to vector<10x10xf32>
    %8 = arith.select %5, %6, %7 : vector<10x10xi1>, vector<10x10xf32>
    %9 = tpu.iota {dimensions = array<i32: 0>} : vector<10x1xi32>
    %10 = vector.broadcast %0 : i32 to vector<10x1xi32>
    %11 = arith.cmpi slt, %9, %10 : vector<10x1xi32>
    %12 = arith.extui %11 : vector<10x1xi1> to vector<10x1xi32>
    %13 = arith.sitofp %12 : vector<10x1xi32> to vector<10x1xf32>
    %c0_4 = arith.constant 0 : index
    %c0_5 = arith.constant 0 : index
    %14 = vector.load %arg3[%c0_4, %c0_5] : memref<224x128xf32, #tpu.memory_space<vmem>>, vector<32x32xf32>
    %c32 = arith.constant 32 : index
    %c0_6 = arith.constant 0 : index
    %15 = vector.load %arg3[%c32, %c0_6] : memref<224x128xf32, #tpu.memory_space<vmem>>, vector<32x32xf32>
    %c64 = arith.constant 64 : index
    %c0_7 = arith.constant 0 : index
    %16 = vector.load %arg3[%c64, %c0_7] : memref<224x128xf32, #tpu.memory_space<vmem>>, vector<32x32xf32>
    %c96 = arith.constant 96 : index
    %c0_8 = arith.constant 0 : index
    %17 = vector.load %arg3[%c96, %c0_8] : memref<224x128xf32, #tpu.memory_space<vmem>>, vector<32x32xf32>
    %c128 = arith.constant 128 : index
    %c0_9 = arith.constant 0 : index
    %18 = vector.load %arg3[%c128, %c0_9] : memref<224x128xf32, #tpu.memory_space<vmem>>, vector<32x64xf32>
    %c160 = arith.constant 160 : index
    %c0_10 = arith.constant 0 : index
    %19 = vector.load %arg3[%c160, %c0_10] : memref<224x128xf32, #tpu.memory_space<vmem>>, vector<64x32xf32>
    %c0_11 = arith.constant 0 : index
    %c0_12 = arith.constant 0 : index
    %20 = vector.load %arg5[%c0_11, %c0_12] : memref<11x128xf32, #tpu.memory_space<vmem>>, vector<1x32xf32>
    %c1 = arith.constant 1 : index
    %c0_13 = arith.constant 0 : index
    %21 = vector.load %arg5[%c1, %c0_13] : memref<11x128xf32, #tpu.memory_space<vmem>>, vector<1x32xf32>
    %c2 = arith.constant 2 : index
    %c0_14 = arith.constant 0 : index
    %22 = vector.load %arg5[%c2, %c0_14] : memref<11x128xf32, #tpu.memory_space<vmem>>, vector<1x32xf32>
    %c3 = arith.constant 3 : index
    %c0_15 = arith.constant 0 : index
    %23 = vector.load %arg5[%c3, %c0_15] : memref<11x128xf32, #tpu.memory_space<vmem>>, vector<1x32xf32>
    %c4 = arith.constant 4 : index
    %c0_16 = arith.constant 0 : index
    %24 = vector.load %arg5[%c4, %c0_16] : memref<11x128xf32, #tpu.memory_space<vmem>>, vector<1x32xf32>
    %c5 = arith.constant 5 : index
    %c0_17 = arith.constant 0 : index
    %25 = vector.load %arg5[%c5, %c0_17] : memref<11x128xf32, #tpu.memory_space<vmem>>, vector<1x32xf32>
    %c6 = arith.constant 6 : index
    %c0_18 = arith.constant 0 : index
    %26 = vector.load %arg5[%c6, %c0_18] : memref<11x128xf32, #tpu.memory_space<vmem>>, vector<1x32xf32>
    %c7 = arith.constant 7 : index
    %c0_19 = arith.constant 0 : index
    %27 = vector.load %arg5[%c7, %c0_19] : memref<11x128xf32, #tpu.memory_space<vmem>>, vector<1x32xf32>
    %c8 = arith.constant 8 : index
    %c0_20 = arith.constant 0 : index
    %28 = vector.load %arg5[%c8, %c0_20] : memref<11x128xf32, #tpu.memory_space<vmem>>, vector<1x64xf32>
    %c9 = arith.constant 9 : index
    %c0_21 = arith.constant 0 : index
    %29 = vector.load %arg5[%c9, %c0_21] : memref<11x128xf32, #tpu.memory_space<vmem>>, vector<1x32xf32>
    %c10 = arith.constant 10 : index
    %c0_22 = arith.constant 0 : index
    %30 = vector.load %arg5[%c10, %c0_22] : memref<11x128xf32, #tpu.memory_space<vmem>>, vector<1x32xf32>
    %cst_23 = arith.constant dense<0.000000e+00> : vector<10x32xf32>
    %31 = tpu.matmul %2, %14, %cst_23 {dimension_numbers = #tpu.dot_dimension_numbers<[1], [0], [0], [1], [0, 0, 1, 1], [], []>} : vector<10x32xf32>, vector<32x32xf32>, vector<10x32xf32> -> vector<10x32xf32>
    %32 = vector.broadcast %20 : vector<1x32xf32> to vector<10x32xf32>
    %33 = arith.addf %31, %32 : vector<10x32xf32>
    %cst_24 = arith.constant dense<0.000000e+00> : vector<10x32xf32>
    %34 = tpu.matmul %2, %15, %cst_24 {dimension_numbers = #tpu.dot_dimension_numbers<[1], [0], [0], [1], [0, 0, 1, 1], [], []>} : vector<10x32xf32>, vector<32x32xf32>, vector<10x32xf32> -> vector<10x32xf32>
    %35 = vector.broadcast %21 : vector<1x32xf32> to vector<10x32xf32>
    %36 = arith.addf %34, %35 : vector<10x32xf32>
    %cst_25 = arith.constant dense<0.000000e+00> : vector<10x32xf32>
    %37 = tpu.matmul %2, %16, %cst_25 {dimension_numbers = #tpu.dot_dimension_numbers<[1], [0], [0], [1], [0, 0, 1, 1], [], []>} : vector<10x32xf32>, vector<32x32xf32>, vector<10x32xf32> -> vector<10x32xf32>
    %38 = vector.broadcast %22 : vector<1x32xf32> to vector<10x32xf32>
    %39 = arith.addf %37, %38 : vector<10x32xf32>
    %40 = tpu.transpose %36, [1, 0] : vector<10x32xf32> -> vector<32x10xf32>
    %cst_26 = arith.constant dense<0.000000e+00> : vector<10x10xf32>
    %41 = tpu.matmul %33, %40, %cst_26 {dimension_numbers = #tpu.dot_dimension_numbers<[1], [0], [0], [1], [0, 0, 1, 1], [], []>} : vector<10x32xf32>, vector<32x10xf32>, vector<10x10xf32> -> vector<10x10xf32>
    %cst_27 = arith.constant 0.176776692 : f32
    %42 = vector.broadcast %cst_27 : f32 to vector<10x10xf32>
    %43 = arith.mulf %41, %42 : vector<10x10xf32>
    %44 = arith.addf %43, %8 : vector<10x10xf32>
    %cst_28 = arith.constant dense<0xFF800000> : vector<10xf32>
    %45 = vector.multi_reduction <maximumf>, %44, %cst_28 [1] : vector<10x10xf32> to vector<10xf32>
    %46 = vector.shape_cast %45 : vector<10xf32> to vector<10x1xf32>
    %47 = vector.broadcast %46 : vector<10x1xf32> to vector<10x10xf32>
    %48 = arith.subf %44, %47 : vector<10x10xf32>
    %49 = math.exp %48 : vector<10x10xf32>
    %cst_29 = arith.constant dense<0.000000e+00> : vector<10xf32>
    %50 = vector.multi_reduction <add>, %49, %cst_29 [1] : vector<10x10xf32> to vector<10xf32>
    %51 = vector.shape_cast %50 : vector<10xf32> to vector<10x1xf32>
    %52 = tpu.reciprocal %51 {approx = true} : vector<10x1xf32> -> vector<10x1xf32>
    %53 = vector.broadcast %52 : vector<10x1xf32> to vector<10x10xf32>
    %54 = arith.mulf %49, %53 : vector<10x10xf32>
    %c0_30 = arith.constant 0 : index
    %c0_31 = arith.constant 0 : index
    %c0_32 = arith.constant 0 : index
    %c0_33 = arith.constant 0 : index
    %55 = vector.load %arg7[%c0_30, %c0_31, %c0_32, %c0_33] : memref<1x1x10x10xf32, #tpu.memory_space<vmem>>, vector<1x1x10x10xf32>
    %56 = vector.shape_cast %55 : vector<1x1x10x10xf32> to vector<10x10xf32>
    %57 = vector.shape_cast %54 : vector<10x10xf32> to vector<1x1x10x10xf32>
    tpu.vector_store %arg7[%c0_30, %c0_31, %c0_32, %c0_33], %57 {strides = array<i32>} : memref<1x1x10x10xf32, #tpu.memory_space<vmem>>, vector<1x1x10x10xf32>,
    %cst_34 = arith.constant dense<0.000000e+00> : vector<10x32xf32>
    %58 = tpu.matmul %54, %39, %cst_34 {dimension_numbers = #tpu.dot_dimension_numbers<[1], [0], [0], [1], [0, 0, 1, 1], [], []>} : vector<10x10xf32>, vector<10x32xf32>, vector<10x32xf32> -> vector<10x32xf32>
    %cst_35 = arith.constant dense<0.000000e+00> : vector<10x32xf32>
    %59 = tpu.matmul %58, %17, %cst_35 {dimension_numbers = #tpu.dot_dimension_numbers<[1], [0], [0], [1], [0, 0, 1, 1], [], []>} : vector<10x32xf32>, vector<32x32xf32>, vector<10x32xf32> -> vector<10x32xf32>
    %60 = vector.broadcast %23 : vector<1x32xf32> to vector<10x32xf32>
    %61 = arith.addf %59, %60 : vector<10x32xf32>
    %62 = arith.addf %2, %61 : vector<10x32xf32>
    %cst_36 = arith.constant dense<0.000000e+00> : vector<10xf32>
    %63 = vector.multi_reduction <add>, %62, %cst_36 [1] : vector<10x32xf32> to vector<10xf32>
    %64 = vector.shape_cast %63 : vector<10xf32> to vector<10x1xf32>
    %cst_37 = arith.constant 3.200000e+01 : f32
    %65 = vector.broadcast %cst_37 : f32 to vector<10x1xf32>
    %66 = arith.divf %64, %65 : vector<10x1xf32>
    %67 = vector.broadcast %66 : vector<10x1xf32> to vector<10x32xf32>
    %68 = arith.subf %62, %67 : vector<10x32xf32>
    %69 = arith.mulf %68, %68 : vector<10x32xf32>
    %cst_38 = arith.constant dense<0.000000e+00> : vector<10xf32>
    %70 = vector.multi_reduction <add>, %69, %cst_38 [1] : vector<10x32xf32> to vector<10xf32>
    %71 = vector.shape_cast %70 : vector<10xf32> to vector<10x1xf32>
    %cst_39 = arith.constant 3.200000e+01 : f32
    %72 = vector.broadcast %cst_39 : f32 to vector<10x1xf32>
    %73 = arith.divf %71, %72 : vector<10x1xf32>
    %74 = vector.broadcast %66 : vector<10x1xf32> to vector<10x32xf32>
    %75 = arith.subf %62, %74 : vector<10x32xf32>
    %cst_40 = arith.constant 9.99999974E-6 : f32
    %76 = vector.broadcast %cst_40 : f32 to vector<10x1xf32>
    %77 = arith.addf %73, %76 : vector<10x1xf32>
    %78 = math.rsqrt %77 : vector<10x1xf32>
    %79 = vector.broadcast %78 : vector<10x1xf32> to vector<10x32xf32>
    %80 = arith.mulf %75, %79 : vector<10x32xf32>
    %81 = vector.broadcast %24 : vector<1x32xf32> to vector<10x32xf32>
    %82 = arith.mulf %80, %81 : vector<10x32xf32>
    %83 = vector.broadcast %25 : vector<1x32xf32> to vector<10x32xf32>
    %84 = arith.addf %82, %83 : vector<10x32xf32>
    %cst_41 = arith.constant dense<0.000000e+00> : vector<10x64xf32>
    %85 = tpu.matmul %84, %18, %cst_41 {dimension_numbers = #tpu.dot_dimension_numbers<[1], [0], [0], [1], [0, 0, 1, 1], [], []>} : vector<10x32xf32>, vector<32x64xf32>, vector<10x64xf32> -> vector<10x64xf32>
    %86 = vector.broadcast %28 : vector<1x64xf32> to vector<10x64xf32>
    %87 = arith.addf %85, %86 : vector<10x64xf32>
    %cst_42 = arith.constant 0.000000e+00 : f32
    %88 = vector.broadcast %cst_42 : f32 to vector<10x64xf32>
    %89 = arith.maximumf %87, %88 : vector<10x64xf32>
    %cst_43 = arith.constant dense<0.000000e+00> : vector<10x32xf32>
    %90 = tpu.matmul %89, %19, %cst_43 {dimension_numbers = #tpu.dot_dimension_numbers<[1], [0], [0], [1], [0, 0, 1, 1], [], []>} : vector<10x64xf32>, vector<64x32xf32>, vector<10x32xf32> -> vector<10x32xf32>
    %91 = vector.broadcast %29 : vector<1x32xf32> to vector<10x32xf32>
    %92 = arith.addf %90, %91 : vector<10x32xf32>
    %93 = arith.addf %84, %92 : vector<10x32xf32>
    %cst_44 = arith.constant dense<0.000000e+00> : vector<10xf32>
    %94 = vector.multi_reduction <add>, %93, %cst_44 [1] : vector<10x32xf32> to vector<10xf32>
    %95 = vector.shape_cast %94 : vector<10xf32> to vector<10x1xf32>
    %cst_45 = arith.constant 3.200000e+01 : f32
    %96 = vector.broadcast %cst_45 : f32 to vector<10x1xf32>
    %97 = arith.divf %95, %96 : vector<10x1xf32>
    %98 = vector.broadcast %97 : vector<10x1xf32> to vector<10x32xf32>
    %99 = arith.subf %93, %98 : vector<10x32xf32>
    %100 = arith.mulf %99, %99 : vector<10x32xf32>
    %cst_46 = arith.constant dense<0.000000e+00> : vector<10xf32>
    %101 = vector.multi_reduction <add>, %100, %cst_46 [1] : vector<10x32xf32> to vector<10xf32>
    %102 = vector.shape_cast %101 : vector<10xf32> to vector<10x1xf32>
    %cst_47 = arith.constant 3.200000e+01 : f32
    %103 = vector.broadcast %cst_47 : f32 to vector<10x1xf32>
    %104 = arith.divf %102, %103 : vector<10x1xf32>
    %105 = vector.broadcast %97 : vector<10x1xf32> to vector<10x32xf32>
    %106 = arith.subf %93, %105 : vector<10x32xf32>
    %cst_48 = arith.constant 9.99999974E-6 : f32
    %107 = vector.broadcast %cst_48 : f32 to vector<10x1xf32>
    %108 = arith.addf %104, %107 : vector<10x1xf32>
    %109 = math.rsqrt %108 : vector<10x1xf32>
    %110 = vector.broadcast %109 : vector<10x1xf32> to vector<10x32xf32>
    %111 = arith.mulf %106, %110 : vector<10x32xf32>
    %112 = vector.broadcast %26 : vector<1x32xf32> to vector<10x32xf32>
    %113 = arith.mulf %111, %112 : vector<10x32xf32>
    %114 = vector.broadcast %27 : vector<1x32xf32> to vector<10x32xf32>
    %115 = arith.addf %113, %114 : vector<10x32xf32>
    %116 = vector.broadcast %13 : vector<10x1xf32> to vector<10x32xf32>
    %117 = arith.mulf %115, %116 : vector<10x32xf32>
    %cst_49 = arith.constant 0.000000e+00 : f32
    %118 = vector.broadcast %cst_49 : f32 to vector<1x1280xf32>
    %c0_50 = arith.constant 0 : index
    %c0_51 = arith.constant 0 : index
    %119 = vector.load %arg8[%c0_50, %c0_51] : memref<1x1280xf32, #tpu.memory_space<vmem>>, vector<1x1280xf32>
    tpu.vector_store %arg8[%c0_50, %c0_51], %118 {strides = array<i32>} : memref<1x1280xf32, #tpu.memory_space<vmem>>, vector<1x1280xf32>,
    %120 = vector.extract_strided_slice %117 {offsets = [0, 0], sizes = [1, 32], strides = [1, 1]} : vector<10x32xf32> to vector<1x32xf32>
    %c0_52 = arith.constant 0 : index
    %c0_53 = arith.constant 0 : index
    %121 = vector.load %arg8[%c0_52, %c0_53] : memref<1x1280xf32, #tpu.memory_space<vmem>>, vector<1x32xf32>
    tpu.vector_store %arg8[%c0_52, %c0_53], %120 {strides = array<i32>} : memref<1x1280xf32, #tpu.memory_space<vmem>>, vector<1x32xf32>,
    %122 = vector.extract_strided_slice %117 {offsets = [1, 0], sizes = [1, 32], strides = [1, 1]} : vector<10x32xf32> to vector<1x32xf32>
    %c0_54 = arith.constant 0 : index
    %c128_55 = arith.constant 128 : index
    %123 = vector.load %arg8[%c0_54, %c128_55] : memref<1x1280xf32, #tpu.memory_space<vmem>>, vector<1x32xf32>
    tpu.vector_store %arg8[%c0_54, %c128_55], %122 {strides = array<i32>} : memref<1x1280xf32, #tpu.memory_space<vmem>>, vector<1x32xf32>,
    %124 = vector.extract_strided_slice %117 {offsets = [2, 0], sizes = [1, 32], strides = [1, 1]} : vector<10x32xf32> to vector<1x32xf32>
    %c0_56 = arith.constant 0 : index
    %c256 = arith.constant 256 : index
    %125 = vector.load %arg8[%c0_56, %c256] : memref<1x1280xf32, #tpu.memory_space<vmem>>, vector<1x32xf32>
    tpu.vector_store %arg8[%c0_56, %c256], %124 {strides = array<i32>} : memref<1x1280xf32, #tpu.memory_space<vmem>>, vector<1x32xf32>,
    %126 = vector.extract_strided_slice %117 {offsets = [3, 0], sizes = [1, 32], strides = [1, 1]} : vector<10x32xf32> to vector<1x32xf32>
    %c0_57 = arith.constant 0 : index
    %c384 = arith.constant 384 : index
    %127 = vector.load %arg8[%c0_57, %c384] : memref<1x1280xf32, #tpu.memory_space<vmem>>, vector<1x32xf32>
    tpu.vector_store %arg8[%c0_57, %c384], %126 {strides = array<i32>} : memref<1x1280xf32, #tpu.memory_space<vmem>>, vector<1x32xf32>,
    %128 = vector.extract_strided_slice %117 {offsets = [4, 0], sizes = [1, 32], strides = [1, 1]} : vector<10x32xf32> to vector<1x32xf32>
    %c0_58 = arith.constant 0 : index
    %c512 = arith.constant 512 : index
    %129 = vector.load %arg8[%c0_58, %c512] : memref<1x1280xf32, #tpu.memory_space<vmem>>, vector<1x32xf32>
    tpu.vector_store %arg8[%c0_58, %c512], %128 {strides = array<i32>} : memref<1x1280xf32, #tpu.memory_space<vmem>>, vector<1x32xf32>,
    %130 = vector.extract_strided_slice %117 {offsets = [5, 0], sizes = [1, 32], strides = [1, 1]} : vector<10x32xf32> to vector<1x32xf32>
    %c0_59 = arith.constant 0 : index
    %c640 = arith.constant 640 : index
    %131 = vector.load %arg8[%c0_59, %c640] : memref<1x1280xf32, #tpu.memory_space<vmem>>, vector<1x32xf32>
    tpu.vector_store %arg8[%c0_59, %c640], %130 {strides = array<i32>} : memref<1x1280xf32, #tpu.memory_space<vmem>>, vector<1x32xf32>,
    %132 = vector.extract_strided_slice %117 {offsets = [6, 0], sizes = [1, 32], strides = [1, 1]} : vector<10x32xf32> to vector<1x32xf32>
    %c0_60 = arith.constant 0 : index
    %c768 = arith.constant 768 : index
    %133 = vector.load %arg8[%c0_60, %c768] : memref<1x1280xf32, #tpu.memory_space<vmem>>, vector<1x32xf32>
    tpu.vector_store %arg8[%c0_60, %c768], %132 {strides = array<i32>} : memref<1x1280xf32, #tpu.memory_space<vmem>>, vector<1x32xf32>,
    %134 = vector.extract_strided_slice %117 {offsets = [7, 0], sizes = [1, 32], strides = [1, 1]} : vector<10x32xf32> to vector<1x32xf32>
    %c0_61 = arith.constant 0 : index
    %c896 = arith.constant 896 : index
    %135 = vector.load %arg8[%c0_61, %c896] : memref<1x1280xf32, #tpu.memory_space<vmem>>, vector<1x32xf32>
    tpu.vector_store %arg8[%c0_61, %c896], %134 {strides = array<i32>} : memref<1x1280xf32, #tpu.memory_space<vmem>>, vector<1x32xf32>,
    %136 = vector.extract_strided_slice %117 {offsets = [8, 0], sizes = [1, 32], strides = [1, 1]} : vector<10x32xf32> to vector<1x32xf32>
    %c0_62 = arith.constant 0 : index
    %c1024 = arith.constant 1024 : index
    %137 = vector.load %arg8[%c0_62, %c1024] : memref<1x1280xf32, #tpu.memory_space<vmem>>, vector<1x32xf32>
    tpu.vector_store %arg8[%c0_62, %c1024], %136 {strides = array<i32>} : memref<1x1280xf32, #tpu.memory_space<vmem>>, vector<1x32xf32>,
    %138 = vector.extract_strided_slice %117 {offsets = [9, 0], sizes = [1, 32], strides = [1, 1]} : vector<10x32xf32> to vector<1x32xf32>
    %c0_63 = arith.constant 0 : index
    %c1152 = arith.constant 1152 : index
    %139 = vector.load %arg8[%c0_63, %c1152] : memref<1x1280xf32, #tpu.memory_space<vmem>>, vector<1x32xf32>
    tpu.vector_store %arg8[%c0_63, %c1152], %138 {strides = array<i32>} : memref<1x1280xf32, #tpu.memory_space<vmem>>, vector<1x32xf32>,
    %c0_64 = arith.constant 0 : index
    %c0_65 = arith.constant 0 : index
    %140 = vector.load %arg8[%c0_64, %c0_65] : memref<1x1280xf32, #tpu.memory_space<vmem>>, vector<1x1280xf32>
    %c0_66 = arith.constant 0 : index
    %c0_67 = arith.constant 0 : index
    %141 = vector.load %arg4[%c0_66, %c0_67] : memref<1280x32xf32, #tpu.memory_space<vmem>>, vector<1280x32xf32>
    %cst_68 = arith.constant dense<0.000000e+00> : vector<1x32xf32>
    %142 = tpu.matmul %140, %141, %cst_68 {dimension_numbers = #tpu.dot_dimension_numbers<[1], [0], [0], [1], [0, 0, 1, 1], [], []>} : vector<1x1280xf32>, vector<1280x32xf32>, vector<1x32xf32> -> vector<1x32xf32>
    %143 = arith.addf %142, %30 : vector<1x32xf32>
    %cst_69 = arith.constant 0.000000e+00 : f32
    %144 = vector.broadcast %cst_69 : f32 to vector<1x32xf32>
    %145 = arith.maximumf %143, %144 : vector<1x32xf32>
    %c0_70 = arith.constant 0 : index
    %c0_71 = arith.constant 0 : index
    %c0_72 = arith.constant 0 : index
    %146 = vector.load %arg6[%c0_70, %c0_71, %c0_72] : memref<1x1x32xf32, #tpu.memory_space<vmem>>, vector<1x1x32xf32>
    %147 = vector.shape_cast %146 : vector<1x1x32xf32> to vector<1x32xf32>
    %148 = vector.shape_cast %145 : vector<1x32xf32> to vector<1x1x32xf32>
    tpu.vector_store %arg6[%c0_70, %c0_71, %c0_72], %148 {strides = array<i32>} : memref<1x1x32xf32, #tpu.memory_space<vmem>>, vector<1x1x32xf32>,
    return
  }
  func.func @transform_0(%arg0: i32, %arg1: memref<1xi32, #tpu.memory_space<smem>>) -> (i32, i32, i32) {
    %c0_i32 = arith.constant 0 : i32
    %c0_i32_0 = arith.constant 0 : i32
    %c0_i32_1 = arith.constant 0 : i32
    return %arg0, %c0_i32, %c0_i32_0 : i32, i32, i32
  }
  func.func @transform_1(%arg0: i32, %arg1: memref<1xi32, #tpu.memory_space<smem>>) -> (i32, i32) {
    %c0_i32 = arith.constant 0 : i32
    %c0_i32_0 = arith.constant 0 : i32
    %c0_i32_1 = arith.constant 0 : i32
    return %c0_i32, %c0_i32_0 : i32, i32
  }
  func.func @transform_2(%arg0: i32, %arg1: memref<1xi32, #tpu.memory_space<smem>>) -> (i32, i32) {
    %c0_i32 = arith.constant 0 : i32
    %c0_i32_0 = arith.constant 0 : i32
    %c0_i32_1 = arith.constant 0 : i32
    return %c0_i32, %c0_i32_0 : i32, i32
  }
  func.func @transform_3(%arg0: i32, %arg1: memref<1xi32, #tpu.memory_space<smem>>) -> (i32, i32) {
    %c0_i32 = arith.constant 0 : i32
    %c0_i32_0 = arith.constant 0 : i32
    %c0_i32_1 = arith.constant 0 : i32
    return %c0_i32, %c0_i32_0 : i32, i32
  }
  func.func @transform_4(%arg0: i32, %arg1: memref<1xi32, #tpu.memory_space<smem>>) -> (i32, i32, i32) {
    %c0_i32 = arith.constant 0 : i32
    %c0_i32_0 = arith.constant 0 : i32
    %c0_i32_1 = arith.constant 0 : i32
    return %arg0, %c0_i32, %c0_i32_0 : i32, i32, i32
  }
  func.func @transform_5(%arg0: i32, %arg1: memref<1xi32, #tpu.memory_space<smem>>) -> (i32, i32, i32, i32) {
    %c0_i32 = arith.constant 0 : i32
    %c0_i32_0 = arith.constant 0 : i32
    %c0_i32_1 = arith.constant 0 : i32
    %c0_i32_2 = arith.constant 0 : i32
    return %arg0, %c0_i32, %c0_i32_0, %c0_i32_1 : i32, i32, i32, i32
  }
}

</mosaic_0001>

<bundles_post_ra>
// kernel: tpu_custom_call.1
= control target key start
LH: loop header
LB: loop body
LE: loop exit
PB: predicated region body
PF: predicated region fallthrough
CT: control target
= control target key end

     0   :  { %s2261_s0 = inlined_call_operand.<no memory space> [shape: s32[1], index: 0, kind: input, shape index: {}]   ;;  %s2262_s1 = inlined_call_operand.vmem [shape: f32[2,10,32], index: 1, kind: input, shape index: {}]   ;;  %s2263_s2 = inlined_call_operand.vmem [shape: f32[224,128], index: 2, kind: input, shape index: {}]   ;;  %s2264_s3 = inlined_call_operand.vmem [shape: f32[1280,32], index: 3, kind: input, shape index: {}]   ;;  %s2265_s4 = inlined_call_operand.vmem [shape: f32[11,128], index: 4, kind: input, shape index: {}]   ;;  %s2266_s5 = inlined_call_operand.hbm [shape: f32[2,1,32], index: 5, kind: output, shape index: {0}]   ;;  %s2267_s6 = inlined_call_operand.vmem [shape: f32[2,1,10,10], index: 6, kind: output, shape index: {1}]  }
   0x1   :  { %12 = sst [smem:[#allocation4]] %s2261_s0 }
   0x2   :  { %13 = vsyncpa [#allocation6], 0 }
   0x3   :  { %15 = vsyncpa [#allocation6 + $0x1], 0  ;;  %s1423_s23 = smov 0   ;;  %s1425_s24 = smov 0  }
   0x4   :  { %s1427_s25 = smov 0   ;;  %s1429_s26 = smov 0  }
   0x5 LB: > { %s1444_s0 = sadd.s32 4294967295, %s1381_s26   ;;  %s1217_s27 = sadd.s32 4294967294, %s1381_s26   ;;  %s1381_s26 = sphi %s1429_s26, %s2275_s26   ;;  %s1377_s25 = sphi %s1427_s25, %s2274_s25   ;;  %s1373_s24 = sphi %s1425_s24, %s2273_s24   ;;  %s1369_s23 = sphi %s1423_s23, %s2272_s23  }
   0x6   : > { %s1448_s28 = sadd.s32 1, %s1381_s26   ;;  %s117_s29 = sadd.s32 1, %s1377_s25 }
   0x7   : > { %s114_s30 = ssub.s32 %s1381_s26, %s1448_s28  ;;  %p127_p0 = scmp.ne.s32.totalorder %s1377_s25, %s1373_s24 }
   0x8   : > { %p115_p1 = scmp.eq.s32.totalorder %s114_s30, 0  ;;  %p128_p2 = scmp.eq.s32.totalorder %s1444_s0, 1 }
   0x9   : > { %p133_p3 = scmp.ne.s32.totalorder %s1373_s24, %s1369_s23  ;;  %p134_p4 = scmp.eq.s32.totalorder %s1217_s27, 1 }
   0xa   : > { %s1459_s7 = scalar_select %p115_p1, %s1377_s25, %s117_s29  }
   0xb   : > { %p1461_p5 = por %p128_p2, %p127_p0  ;;  %p1465_p6 = por %p134_p4, %p133_p3 }
   0xc   : > { %p1220_p7 = scmp.ge.s32.totalorder %s1381_s26, 1  ;;  %p195_p8 = scmp.lt.s32.totalorder %s1381_s26, 3 }
   0xe   : > { %p196_p9 = pnand %p1220_p7, %p195_p8 }
   0xf   : > { %p227_p10 = scmp.lt.s32.totalorder (!%p196_p9), %s1444_s0, 1  ;;  %s237_s19 = sld [smem:[#allocation4]] (!%p196_p9) }
  0x10   : > { %199 = sbr.rel (%p196_p9) target bundleno = 1870 (0x74e), region = 36  ;;  %s1130_s27 = scalar_lea.hbm (!%p196_p9), %s2266_s5, %s1444_s0 }
  0x11   : > { %s1134_s11 = sshll.u32 (!%p196_p9), %s1130_s27, 4  ;;  %s1135_s11 = int_to_ptr.hbm [resolvable:$true] %s1134_s11 }
  0x15   : > { %v261_v0 = vld [vmem:[%s2263_s2 + $0x38] sm:$0xff]  ;;  %v260_v1 = vld [vmem:[%s2263_s2 + $0x30] sm:$0xff]  ;;  %v259_v4 = vld [vmem:[%s2263_s2 + $0x28] sm:$0xff]  ;;  %s1491_s22 = scalar_select %p227_p10, %s1444_s0, 1  ;;  %vm294_vm0 = vcmask 261120   ;;  %v240_v20 = vlaneseq  ;;  %v242_v22 = vstv %s237_s19  ;;  %v1383_v23 = vmov 0.0  }
  0x16   : > { %337 = vmatpush.msra.mxu3 %v261_v0  ;;  %v257_v2 = vld [vmem:[%s2263_s2 + $0x18] sm:$0xff]  ;;  %v256_v3 = vld [vmem:[%s2263_s2 + $0x10] sm:$0xff]  ;;  %v258_v5 = vld [vmem:[%s2263_s2 + $0x20] sm:$0xff]  ;;  %677 = vst [vmem:[#allocation2] sm:$0xff] %v1383_v23  ;;  %vm411_vm5 = vcmask 80896   ;;  %vm415_vm6 = vcmask 74752  }
  0x17   : > { %313 = vmatpush.msra.mxu2 %v257_v2  ;;  %v255_v6 = vld [vmem:[%s2263_s2 + $0x8] sm:$0xff]  ;;  %s1248_s30 = sshll.u32 %s1491_s22, 4  ;;  %v254_v7 = vld [vmem:[%s2263_s2] sm:$0xff]  ;;  %v246_v21 = vshrl.u32 %v240_v20, 7  ;;  %vm680_vm3 = vcmp.lt.s32.totalorder %v240_v20, 256  ;;  %v265_v27 = vld [vmem:[%s2263_s2 + $0x58] sm:$0xff] }
  0x18   : > { %338 = vmatpush.msra.mxu3 %v260_v1  ;;  %s231_s14 = scalar_lea.vmem %s2262_s1, %s1248_s30  ;;  %v1291_v11 = vld [vmem:[%s2265_s4 + $0x1] ss:$0 sm:$0xff]  ;;  %v1292_v15 = vld [vmem:[%s2265_s4] ss:$0 sm:$0xff]  ;;  %682 = vst.msk [vmem:[#allocation2 + $0x8] sm:$0x3] %vm680_vm3, %v1383_v23  ;;  %s236_s10 = scalar_lea.vmem %s2267_s6, %s1248_s30 }
  0x19   : > { %314 = vmatpush.msra.mxu2 %v256_v3  ;;  %v1505_v8 = vld [vmem:[%s231_s14] sm:$0xff]  ;;  %v1511_v9 = vld [vmem:[%s231_s14 + $0x8] sm:$0x3]  ;;  %v247_v24 = vadd.s32 8, %v246_v21  ;;  %vm248_vm1 = vcmp.lt.s32.totalorder %v246_v21, %v242_v22  ;;  %v264_v28 = vld [vmem:[%s2263_s2 + $0x50] sm:$0xff]  ;;  %v241_v31 = vand.u32 127, %v240_v20 }
  0x1a   : > { %339 = vmatpush.msra.mxu3 %v259_v4  ;;  %v1528_v25 = vsel %vm248_vm1, 1.0, %v1383_v23  ;;  %v263_v29 = vld [vmem:[%s2263_s2 + $0x48] sm:$0xff]  ;;  %v262_v30 = vld [vmem:[%s2263_s2 + $0x40] sm:$0xff]  ;;  %vm443_vm7 = vcmask 1041408   ;;  %v269_v56 = vld [vmem:[%s2263_s2 + $0x78] sm:$0xff]  ;;  %vm505_vm8 = vcmask 254976  }
  0x1b   : > { %315 = vmatpush.msra.mxu2 %v255_v6  ;;  %vm249_vm2 = vcmp.lt.s32.totalorder %v247_v24, %v242_v22  ;;  %vm243_vm4 = vcmp.ge.s32.totalorder %v241_v31, %v242_v22  ;;  %v1293_v52 = vld [vmem:[%s2265_s4 + $0x2] ss:$0 sm:$0xff]  ;;  %v268_v57 = vld [vmem:[%s2263_s2 + $0x70] sm:$0xff]  ;;  %489 = vmatpush.msra.mxu1 %v269_v56  ;;  %v267_v58 = vld [vmem:[%s2263_s2 + $0x68] sm:$0xff]  ;;  %vm593_vm1 = vcmask 523264   ;;  %s218_s19 = sand.u32 1, %s1373_s24  }
  0x1c   : > { %340 = vmatpush.msra.mxu3 %v258_v5  ;;  %v1531_v26 = vsel %vm249_vm2, 1.0, %v1383_v23  ;;  %v244_v33 = vsel %vm243_vm4, -1e+30, %v1383_v23  ;;  %v266_v1 = vld [vmem:[%s2263_s2 + $0x60] sm:$0xff]  ;;  %s219_s29 = scalar_lea.vmem [#allocation5], %s218_s19  ;;  %s1117_s12 = scalar_lea.sflag [#allocation6], %s218_s19 }
  0x1d   : > { %1229 = vmatmul.msk.f32.vlgmr.msra.gmra.mxu3 %vm294_vm0, %v1505_v8  ;;  %316 = vmatpush.msra.mxu2 %v254_v7  ;;  %v1294_v4 = vld [vmem:[%s2265_s4 + $0x3] ss:$0 sm:$0xff]  ;;  %v1295_v56 = vld [vmem:[%s2265_s4 + $0x4] ss:$0 sm:$0xff]  ;;  %s1333_s22 = sshra.s32 %s1135_s11, 4  ;;  %s1339_s14 = scalar_lea.hbm %s2266_s5, 2  ;;  %s1334_s22 = int_to_ptr.hbm [resolvable:$true] %s1333_s22 }
  0x1e   : > { %1227 = vmatmul.msk.f32.vlgmr.msra.gmra.mxu2 %vm294_vm0, %v1505_v8  ;;  %490 = vmatpush.msra.mxu1 %v268_v57  ;;  %s1335_s30 = scalar_lea.hbm %s1334_s22, 1  ;;  %p1340_p0 = scmp.lt.s32.totalorder %s1334_s22, %s2266_s5 }
  0x1f   : > { %361 = vmatpush.msrb.mxu2 %v265_v27  ;;  %p1336_p11 = scmp.ne.s32.totalorder %s1334_s22, %s1335_s30  ;;  %p1341_p1 = scmp.lt.s32.totalorder %s1339_s14, %s1335_s30 }
  0x20   : > { %491 = vmatpush.msra.mxu1 %v267_v58 }
  0x21   : > { %362 = vmatpush.msrb.mxu2 %v264_v28  ;;  %p1337_p12 = pnand %p1336_p11, %p1461_p5  ;;  %p1342_p2 = por %p1341_p1, %p1340_p0 }
  0x22   : > { %492 = vmatpush.msra.mxu1 %v266_v1 }
  0x23   : > { %363 = vmatpush.msrb.mxu2 %v263_v29  ;;  %p1338_p13 = pneg %p1337_p12 }
  0x25   : > { %1230 = vmatmul.msk.f32.gmra.mxu3 %vm294_vm0, %v1511_v9  ;;  %364 = vmatpush.msrb.mxu2 %v262_v30  ;;  %p1343_p3 = pnand %p1342_p2, %p1338_p13 }
  0x26   : > { %1228 = vmatmul.msk.f32.gmra.mxu2 %vm294_vm0, %v1511_v9 }
  0x2e   : > { %1231 = vmatmul.msk.f32.vlgmr.msrb.gmra.mxu2 %vm294_vm0, %v1505_v8 }
  0x36   : > { %1232 = vmatmul.msk.f32.gmra.mxu2 %vm294_vm0, %v1511_v9 }
  0xa0   : > { %v342_v10 = vpop.f32.mrf.mxu3 }
  0xa1   : > { %v318_v14 = vpop.f32.mrf.mxu2  ;;  %v343_v16 = vadd.f32 %v1291_v11, %v342_v10 }
  0xa2   : > { %v319_v17 = vadd.f32 %v1292_v15, %v318_v14 }
  0xa8   : > { %v345_v12 = vpop.f32.mrf.mxu3 }
  0xa9   : > { %v346_v13 = vadd.f32 %v1291_v11, %v345_v12  ;;  %v321_v18 = vpop.f32.mrf.mxu2 }
  0xaa   : > { %v322_v19 = vadd.f32 %v1292_v15, %v321_v18  ;;  %v1384_v15 = vmov 32.0  }
  0xab   : > { %1233 = vmatpush.xpose.msk.msrb.mxu3 %vm294_vm0, %v346_v13 }
  0xaf   : > { %1234 = vmatpush.xpose.msk.msrb.mxu3 %vm294_vm0, %v343_v16 }
  0xb1   : > { %v366_v51 = vpop.f32.mrf.mxu2 }
  0xb2   : > { %1235 = vmatmul.msk.f32.vlgmr.msrb.gmra.mxu3 %vm294_vm0, %v319_v17  ;;  %v367_v54 = vadd.f32 %v1293_v52, %v366_v51 }
  0xb9   : > { %v369_v53 = vpop.f32.mrf.mxu2 }
  0xba   : > { %1236 = vmatmul.msk.f32.gmra.mxu3 %vm294_vm0, %v322_v19  ;;  %v370_v55 = vadd.f32 %v1293_v52, %v369_v53 }
  0xbc   : > { %1237 = vmatpush.msk.msra.mxu0 %vm443_vm7, %v370_v55 }
  0xbe   : > { %462 = vmatpush.msra.mxu0 %v367_v54 }
 0x135   : > { %v401_v32 = vpop.f32.mrf.mxu3 }
 0x136   : > { %v407_v34 = vmul.f32 0.17677669, %v401_v32 }
 0x138   : > { %v409_v35 = vadd.f32 %v407_v34, %v244_v33  ;;  %v272_v34 = vld [vmem:[%s2263_s2 + $0x90] sm:$0xff] }
 0x13a   : > { %v412_v36 = vsel %vm411_vm5, %v409_v35, -inf }
 0x13b   : > { %413 = vmax.xlane.f32.xlu0 %v412_v36  ;;  %v270_v36 = vld [vmem:[%s2263_s2 + $0x80] sm:$0xff] }
 0x13d   : > { %v404_v37 = vpop.f32.mrf.mxu3 }
 0x13e   : > { %v408_v38 = vmul.f32 0.17677669, %v404_v37 }
 0x140   : > { %v410_v39 = vadd.f32 %v408_v38, %v244_v33  ;;  %v273_v33 = vld [vmem:[%s2263_s2 + $0x98] sm:$0xff] }
 0x141   : > { %579 = vmatpush.msra.mxu2 %v273_v33 }
 0x142   : > { %v416_v40 = vsel %vm415_vm6, %v410_v39, -inf }
 0x143   : > { %417 = vmax.xlane.f32.xlu1 %v416_v40  ;;  %580 = vmatpush.msra.mxu2 %v272_v34  ;;  %v281_v40 = vld [vmem:[%s2263_s2 + $0xd8] sm:$0xff] }
 0x144   : > { %608 = vmatpush.msra.mxu3 %v281_v40 }
 0x1ae   : > { %v414_v41 = vpop.xlane.xlu0 %413 }
 0x1af   : > { %v419_v42 = vsub.f32 %v409_v35, %v414_v41  ;;  %v271_v35 = vld [vmem:[%s2263_s2 + $0x88] sm:$0xff]  ;;  %v280_v41 = vld [vmem:[%s2263_s2 + $0xd0] sm:$0xff] }
 0x1b0   : > { %581 = vmatpush.msra.mxu2 %v271_v35  ;;  %609 = vmatpush.msra.mxu3 %v280_v41 }
 0x1b1   : > { %v421_v43 = vmul.f32 1.442695, %v419_v42  ;;  %v279_v42 = vld [vmem:[%s2263_s2 + $0xc8] sm:$0xff] }
 0x1b2   : > { %582 = vmatpush.msra.mxu2 %v270_v36  ;;  %610 = vmatpush.msra.mxu3 %v279_v42  ;;  %v746_v42 = vld [vmem:[%s2264_s3 + $0x78] sm:$0xff] }
 0x1b3   : > { %1301 = vpow2.f32 %v421_v43  ;;  %913 = vmatpush.msrb.mxu0 %v746_v42  ;;  %v887_v42 = vld [vmem:[%s2264_s3 + $0x4e0] sm:$0xff] }
 0x1b6   : > { %v418_v44 = vpop.xlane.xlu1 %417 }
 0x1b7   : > { %v420_v45 = vsub.f32 %v410_v39, %v418_v44 }
 0x1b9   : > { %v1302_v46 = vpop.eup %1301  ;;  %v423_v47 = vmul.f32 1.442695, %v420_v45  ;;  %v278_v45 = vld [vmem:[%s2263_s2 + $0xc0] sm:$0xff] }
 0x1ba   : > { %v425_v48 = vsel %vm411_vm5, %v1302_v46, 0.0  ;;  %611 = vmatpush.msra.mxu3 %v278_v45  ;;  %v761_v45 = vld [vmem:[%s2264_s3 + $0xf0] sm:$0xff] }
 0x1bb   : > { %1303 = vpow2.f32 %v423_v47  ;;  %426 = vadd.xlane.f32.xlu0 %v425_v48  ;;  %v277_v48 = vld [vmem:[%s2263_s2 + $0xb8] sm:$0xff] }
 0x1bc   : > { %612 = vmatpush.msra.mxu3 %v277_v48  ;;  %v760_v48 = vld [vmem:[%s2264_s3 + $0xe8] sm:$0xff] }
 0x1c1   : > { %v1304_v49 = vpop.eup %1303 }
 0x1c2   : > { %v428_v50 = vsel %vm415_vm6, %v1304_v49, 0.0 }
 0x1c3   : > { %429 = vadd.xlane.f32.xlu1 %v428_v50 }
 0x22e   : > { %v427_v59 = vpop.xlane.xlu0 %426 }
 0x22f   : > { %1305 = vrcp.f32 %v427_v59 }
 0x235   : > { %v1306_v60 = vpop.eup %1305 }
 0x236   : > { %v430_v61 = vpop.xlane.xlu1 %429  ;;  %v433_v62 = vmul.f32 %v1306_v60, %v1302_v46  ;;  %v1296_v60 = vld [vmem:[%s2265_s4 + $0x5] ss:$0 sm:$0xff] }
 0x237   : > { %1307 = vrcp.f32 %v430_v61 }
 0x238   : > { %435 = vst.msk [vmem:[%s236_s10] sm:$0xff] %vm411_vm5, %v433_v62  ;;  %1238 = vmatmul.msk.f32.vlgmr.msra.gmra.mxu0 %vm411_vm5, %v433_v62  ;;  %1309 = vrcp.f32 %v1384_v15 }
 0x23d   : > { %v1308_v63 = vpop.eup %1307 }
 0x23e   : > { %v434_v0 = vmul.f32 %v1308_v63, %v1304_v49  ;;  %v1310_v16 = vpop.eup %1309 }
 0x23f   : > { %v510_v17 = vmul.f32 32.0, %v1310_v16  ;;  %vm514_vm9 = vweird.f32 %v1310_v16 }
 0x240   : > { %436 = vst.msk [vmem:[%s236_s10 + $0x8] sm:$0x3] %vm415_vm6, %v434_v0  ;;  %1239 = vmatmul.msk.f32.gmra.mxu0 %vm411_vm5, %v434_v0  ;;  %vm1818_vm5 = vcmp.lt.s32.totalorder %v240_v20, 32  ;;  %v770_v20 = vld [vmem:[%s2264_s3 + $0x138] sm:$0xff]  ;;  %s1132_s10 = sshll.u32 %s219_s29, 4  ;;  %s1133_s10 = int_to_ptr.vmem [resolvable:$true] %s1132_s10 }
 0x241   : > { %v511_v18 = vsub.f32 1.0, %v510_v17 }
 0x243   : > { %v512_v19 = vmul.f32 %v1310_v16, %v511_v18  ;;  %v1298_v18 = vld [vmem:[%s2265_s4 + $0x9] ss:$0 sm:$0xff] }
 0x245   : > { %v513_v21 = vadd.f32 %v1310_v16, %v512_v19 }
 0x2b5   : > { %v464_v2 = vpop.f32.mrf.mxu0 }
 0x2b6   : > { %1240 = vmatmul.msk.f32.vlgmr.msra.gmra.mxu1 %vm294_vm0, %v464_v2 }
 0x2bd   : > { %v467_v3 = vpop.f32.mrf.mxu0 }
 0x2be   : > { %1241 = vmatmul.msk.f32.gmra.mxu1 %vm294_vm0, %v467_v3 }
 0x333   : > { %v494_v5 = vpop.f32.mrf.mxu1 }
 0x334   : > { %v495_v6 = vadd.f32 %v1294_v4, %v494_v5 }
 0x336   : > { %v500_v7 = vadd.f32 %v495_v6, %v1505_v8  ;;  %v1587_v8 = vsel %vm514_vm9, %v1310_v16, %v513_v21  ;;  %v276_v6 = vld [vmem:[%s2263_s2 + $0xb0] sm:$0xff] }
 0x337   : > { %613 = vmatpush.msra.mxu3 %v276_v6  ;;  %v755_v6 = vld [vmem:[%s2264_s3 + $0xc0] sm:$0xff] }
 0x338   : > { %v502_v10 = vsel %vm294_vm0, %v500_v7, 0.0 }
 0x339   : > { %503 = vadd.xlane.f32.xlu2 %v502_v10  ;;  %v274_v10 = vld [vmem:[%s2263_s2 + $0xa0] sm:$0xff] }
 0x33b   : > { %v497_v11 = vpop.f32.mrf.mxu1 }
 0x33c   : > { %v498_v12 = vadd.f32 %v1294_v4, %v497_v11  ;;  %v1297_v11 = vld [vmem:[%s2265_s4 + $0x8] ss:$0 sm:$0xff] }
 0x33e   : > { %v501_v13 = vadd.f32 %v498_v12, %v1511_v9 }
 0x340   : > { %v506_v14 = vsel %vm505_vm8, %v501_v13, 0.0 }
 0x341   : > { %507 = vadd.xlane.f32.xlu0 %v506_v14 }
 0x3ac   : > { %v504_v22 = vpop.xlane.xlu2 %503 }
 0x3ad   : > { %v516_v23 = vmul.f32 %v1587_v8, %v504_v22 }
 0x3af   : > { %v518_v24 = vsub.f32 %v500_v7, %v516_v23  ;;  %v275_v7 = vld [vmem:[%s2263_s2 + $0xa8] sm:$0xff] }
 0x3b0   : > { %614 = vmatpush.msra.mxu3 %v275_v7  ;;  %v775_v7 = vld [vmem:[%s2264_s3 + $0x160] sm:$0xff] }
 0x3b1   : > { %v520_v27 = vmul.f32 %v518_v24, %v518_v24 }
 0x3b2   : > { %615 = vmatpush.msra.mxu3 %v274_v10 }
 0x3b3   : > { %v522_v9 = vsel %vm294_vm0, %v520_v27, 0.0 }
 0x3b4   : > { %523 = vadd.xlane.f32.xlu2 %v522_v9  ;;  %v508_v28 = vpop.xlane.xlu0 %507 }
 0x3b5   : > { %v517_v29 = vmul.f32 %v1587_v8, %v508_v28 }
 0x3b7   : > { %v519_v30 = vsub.f32 %v501_v13, %v517_v29 }
 0x3b9   : > { %v521_v31 = vmul.f32 %v519_v30, %v519_v30 }
 0x3bb   : > { %v525_v32 = vsel %vm505_vm8, %v521_v31, 0.0 }
 0x3bc   : > { %526 = vadd.xlane.f32.xlu1 %v525_v32 }
 0x427   : > { %v524_v37 = vpop.xlane.xlu2 %523 }
 0x428   : > { %v528_v38 = vmul.f32 %v524_v37, %v1587_v8 }
 0x42a   : > { %v530_v39 = vadd.f32 1e-05, %v528_v38 }
 0x42c   : > { %1311 = vrsqrt.f32 %v530_v39  ;;  %vm538_vm11 = vweird.f32 %v530_v39 }
 0x42f   : > { %v527_v43 = vpop.xlane.xlu1 %526 }
 0x430   : > { %v529_v44 = vmul.f32 %v527_v43, %v1587_v8  ;;  %v762_v43 = vld [vmem:[%s2264_s3 + $0xf8] sm:$0xff] }
 0x431   : > { %933 = vmatpush.msrb.mxu1 %v762_v43 }
 0x432   : > { %v1312_v46 = vpop.eup %1311  ;;  %v531_v47 = vadd.f32 1e-05, %v529_v44  ;;  %v745_v44 = vld [vmem:[%s2264_s3 + $0x70] sm:$0xff] }
 0x433   : > { %v533_v49 = vmul.f32 %v1312_v46, %v530_v39  ;;  %vm539_vm10 = vweird.f32 %v1312_v46  ;;  %914 = vmatpush.msrb.mxu0 %v745_v44  ;;  %934 = vmatpush.msrb.mxu1 %v761_v45  ;;  %v734_v44 = vld [vmem:[%s2264_s3 + $0x18] sm:$0xff] }
 0x434   : > { %1313 = vrsqrt.f32 %v531_v47  ;;  %vm540_vm12 = vmor %vm538_vm11, %vm539_vm10  ;;  %vm548_vm14 = vweird.f32 %v531_v47  ;;  %v750_v45 = vld [vmem:[%s2264_s3 + $0x98] sm:$0xff] }
 0x435   : > { %v534_v50 = vmul.f32 %v1312_v46, %v533_v49  ;;  %935 = vmatpush.msrb.mxu1 %v760_v48 }
 0x437   : > { %v535_v51 = vmul.f32 0.5, %v534_v50  ;;  %v743_v50 = vld [vmem:[%s2264_s3 + $0x60] sm:$0xff] }
 0x439   : > { %v536_v52 = vsub.f32 1.5, %v535_v51  ;;  %v759_v51 = vld [vmem:[%s2264_s3 + $0xe0] sm:$0xff] }
 0x43a   : > { %v1314_v53 = vpop.eup %1313  ;;  %936 = vmatpush.msrb.mxu1 %v759_v51 }
 0x43b   : > { %v537_v54 = vmul.f32 %v1312_v46, %v536_v52  ;;  %v543_v55 = vmul.f32 %v1314_v53, %v531_v47  ;;  %vm549_vm13 = vweird.f32 %v1314_v53  ;;  %v744_v47 = vld [vmem:[%s2264_s3 + $0x68] sm:$0xff] }
 0x43c   : > { %vm550_vm15 = vmor %vm548_vm14, %vm549_vm13  ;;  %915 = vmatpush.msrb.mxu0 %v744_v47  ;;  %v786_v47 = vld [vmem:[%s2264_s3 + $0x1b8] sm:$0xff] }
 0x43d   : > { %v541_v57 = vsel %vm540_vm12, %v1312_v46, %v537_v54  ;;  %v544_v58 = vmul.f32 %v1314_v53, %v543_v55  ;;  %v758_v55 = vld [vmem:[%s2264_s3 + $0xd8] sm:$0xff] }
 0x43e   : > { %v552_v59 = vmul.f32 %v541_v57, %v518_v24  ;;  %916 = vmatpush.msrb.mxu0 %v743_v50  ;;  %937 = vmatpush.msrb.mxu1 %v758_v55  ;;  %v794_v57 = vld [vmem:[%s2264_s3 + $0x1f8] sm:$0xff]  ;;  %v769_v50 = vld [vmem:[%s2264_s3 + $0x130] sm:$0xff]  ;;  %v784_v55 = vld [vmem:[%s2264_s3 + $0x1a8] sm:$0xff] }
 0x43f   : > { %v545_v61 = vmul.f32 0.5, %v544_v58  ;;  %973 = vmatpush.msrb.mxu3 %v794_v57  ;;  %v747_v57 = vld [vmem:[%s2264_s3 + $0x80] sm:$0xff] }
 0x440   : > { %v555_v62 = vmul.f32 %v1295_v56, %v552_v59  ;;  %v741_v59 = vld [vmem:[%s2264_s3 + $0x50] sm:$0xff] }
 0x441   : > { %v546_v63 = vsub.f32 1.5, %v545_v61  ;;  %v777_v61 = vld [vmem:[%s2264_s3 + $0x170] sm:$0xff] }
 0x442   : > { %v558_v0 = vadd.f32 %v1296_v60, %v555_v62  ;;  %v793_v62 = vld [vmem:[%s2264_s3 + $0x1f0] sm:$0xff] }
 0x443   : > { %v547_v1 = vmul.f32 %v1314_v53, %v546_v63  ;;  %974 = vmatpush.msrb.mxu3 %v793_v62  ;;  %v826_v62 = vld [vmem:[%s2264_s3 + $0x2f8] sm:$0xff] }
 0x444   : > { %1242 = vmatmul.msk.f32.vlgmr.msra.gmra.mxu2 %vm294_vm0, %v558_v0 }
 0x445   : > { %v551_v2 = vsel %vm550_vm15, %v1314_v53, %v547_v1  ;;  %v756_v1 = vld [vmem:[%s2264_s3 + $0xc8] sm:$0xff] }
 0x446   : > { %v553_v3 = vmul.f32 %v551_v2, %v519_v30  ;;  %v776_v2 = vld [vmem:[%s2264_s3 + $0x168] sm:$0xff] }
 0x448   : > { %v556_v4 = vmul.f32 %v1295_v56, %v553_v3  ;;  %v778_v56 = vld [vmem:[%s2264_s3 + $0x178] sm:$0xff]  ;;  %v792_v3 = vld [vmem:[%s2264_s3 + $0x1e8] sm:$0xff] }
 0x449   : > { %953 = vmatpush.msrb.mxu2 %v778_v56  ;;  %975 = vmatpush.msrb.mxu3 %v792_v3  ;;  %v731_v56 = vld [vmem:[%s2264_s3] sm:$0xff]  ;;  %v825_v3 = vld [vmem:[%s2264_s3 + $0x2f0] sm:$0xff] }
 0x44a   : > { %v559_v5 = vadd.f32 %v1296_v60, %v556_v4  ;;  %v757_v60 = vld [vmem:[%s2264_s3 + $0xd0] sm:$0xff] }
 0x44b   : > { %938 = vmatpush.msrb.mxu1 %v757_v60  ;;  %954 = vmatpush.msrb.mxu2 %v777_v61  ;;  %v783_v60 = vld [vmem:[%s2264_s3 + $0x1a0] sm:$0xff]  ;;  %v810_v61 = vld [vmem:[%s2264_s3 + $0x278] sm:$0xff] }
 0x44c   : > { %1243 = vmatmul.msk.f32.gmra.mxu2 %vm294_vm0, %v559_v5 }
 0x44d   : > { %939 = vmatpush.msrb.mxu1 %v756_v1  ;;  %955 = vmatpush.msrb.mxu2 %v776_v2  ;;  %v809_v2 = vld [vmem:[%s2264_s3 + $0x270] sm:$0xff] }
 0x44f   : > { %940 = vmatpush.msrb.mxu1 %v755_v6  ;;  %956 = vmatpush.msrb.mxu2 %v775_v7  ;;  %v808_v6 = vld [vmem:[%s2264_s3 + $0x268] sm:$0xff] }
 0x450   : > { %v824_v7 = vld [vmem:[%s2264_s3 + $0x2e8] sm:$0xff] }
 0x4c7   : > { %v584_v12 = vpop.f32.mrf.mxu2 }
 0x4c8   : > { %v585_v13 = vadd.f32 %v1297_v11, %v584_v12 }
 0x4ca   : > { %v590_v14 = vmax.f32 %v585_v13, 0.0 }
 0x4cc   : > { %1244 = vmatmul.msk.f32.vlgmr.msra.gmra.mxu3 %vm593_vm1, %v590_v14  ;;  %v738_v14 = vld [vmem:[%s2264_s3 + $0x38] sm:$0xff] }
 0x4cf   : > { %v587_v15 = vpop.f32.mrf.mxu2 }
 0x4d0   : > { %v588_v16 = vadd.f32 %v1297_v11, %v587_v15  ;;  %v791_v11 = vld [vmem:[%s2264_s3 + $0x1e0] sm:$0xff]  ;;  %v754_v15 = vld [vmem:[%s2264_s3 + $0xb8] sm:$0xff] }
 0x4d1   : > { %976 = vmatpush.msrb.mxu3 %v791_v11  ;;  %941 = vmatpush.msrb.mxu1 %v754_v15  ;;  %v780_v11 = vld [vmem:[%s2264_s3 + $0x188] sm:$0xff]  ;;  %v779_v15 = vld [vmem:[%s2264_s3 + $0x180] sm:$0xff] }
 0x4d2   : > { %v591_v17 = vmax.f32 %v588_v16, 0.0  ;;  %v774_v16 = vld [vmem:[%s2264_s3 + $0x158] sm:$0xff] }
 0x4d3   : > { %957 = vmatpush.msrb.mxu2 %v774_v16  ;;  %v806_v16 = vld [vmem:[%s2264_s3 + $0x258] sm:$0xff] }
 0x4d4   : > { %1245 = vmatmul.msk.f32.gmra.mxu3 %vm593_vm1, %v591_v17  ;;  %v1763_v17 = vld [vmem:[%s2265_s4 + $0x6] ss:$0 sm:$0xff] }
 0x54f   : > { %v617_v19 = vpop.f32.mrf.mxu3 }
 0x550   : > { %v618_v21 = vadd.f32 %v1298_v18, %v617_v19 }
 0x552   : > { %v623_v22 = vadd.f32 %v618_v21, %v558_v0  ;;  %v740_v0 = vld [vmem:[%s2264_s3 + $0x48] sm:$0xff] }
 0x554   : > { %v625_v23 = vsel %vm294_vm0, %v623_v22, 0.0 }
 0x555   : > { %626 = vadd.xlane.f32.xlu2 %v625_v23  ;;  %v753_v23 = vld [vmem:[%s2264_s3 + $0xb0] sm:$0xff] }
 0x556   : > { %942 = vmatpush.msrb.mxu1 %v753_v23  ;;  %v841_v23 = vld [vmem:[%s2264_s3 + $0x370] sm:$0xff] }
 0x557   : > { %v620_v24 = vpop.f32.mrf.mxu3 }
 0x558   : > { %v621_v27 = vadd.f32 %v1298_v18, %v620_v24  ;;  %v790_v18 = vld [vmem:[%s2264_s3 + $0x1d8] sm:$0xff]  ;;  %v773_v24 = vld [vmem:[%s2264_s3 + $0x150] sm:$0xff] }
 0x559   : > { %977 = vmatpush.msrb.mxu3 %v790_v18  ;;  %958 = vmatpush.msrb.mxu2 %v773_v24  ;;  %v842_v18 = vld [vmem:[%s2264_s3 + $0x378] sm:$0xff]  ;;  %v857_v24 = vld [vmem:[%s2264_s3 + $0x3f0] sm:$0xff] }
 0x55a   : > { %v624_v9 = vadd.f32 %v621_v27, %v559_v5  ;;  %v739_v5 = vld [vmem:[%s2264_s3 + $0x40] sm:$0xff] }
 0x55b   : > { %v1784_v27 = vld [vmem:[%s2265_s4 + $0x7] ss:$0 sm:$0xff] }
 0x55c   : > { %v628_v28 = vsel %vm505_vm8, %v624_v9, 0.0 }
 0x55d   : > { %629 = vadd.xlane.f32.xlu1 %v628_v28  ;;  %v789_v28 = vld [vmem:[%s2264_s3 + $0x1d0] sm:$0xff] }
 0x55e   : > { %978 = vmatpush.msrb.mxu3 %v789_v28  ;;  %v820_v28 = vld [vmem:[%s2264_s3 + $0x2c8] sm:$0xff] }
 0x5c8   : > { %v627_v29 = vpop.xlane.xlu2 %626 }
 0x5c9   : > { %v631_v30 = vmul.f32 %v627_v29, %v1587_v8 }
 0x5cb   : > { %v1648_v31 = vsub.f32 %v623_v22, %v631_v30  ;;  %v737_v22 = vld [vmem:[%s2264_s3 + $0x30] sm:$0xff]  ;;  %v736_v30 = vld [vmem:[%s2264_s3 + $0x28] sm:$0xff] }
 0x5cd   : > { %v635_v32 = vmul.f32 %v1648_v31, %v1648_v31 }
 0x5cf   : > { %v637_v33 = vsel %vm294_vm0, %v635_v32, 0.0  ;;  %v752_v32 = vld [vmem:[%s2264_s3 + $0xa8] sm:$0xff] }
 0x5d0   : > { %638 = vadd.xlane.f32.xlu0 %v637_v33  ;;  %v630_v34 = vpop.xlane.xlu1 %629  ;;  %943 = vmatpush.msrb.mxu1 %v752_v32  ;;  %v803_v32 = vld [vmem:[%s2264_s3 + $0x240] sm:$0xff] }
 0x5d1   : > { %v632_v35 = vmul.f32 %v630_v34, %v1587_v8  ;;  %v788_v34 = vld [vmem:[%s2264_s3 + $0x1c8] sm:$0xff] }
 0x5d2   : > { %979 = vmatpush.msrb.mxu3 %v788_v34  ;;  %v855_v34 = vld [vmem:[%s2264_s3 + $0x3e0] sm:$0xff] }
 0x5d3   : > { %v1654_v36 = vsub.f32 %v624_v9, %v632_v35 }
 0x5d5   : > { %v636_v37 = vmul.f32 %v1654_v36, %v1654_v36 }
 0x5d7   : > { %v640_v38 = vsel %vm505_vm8, %v636_v37, 0.0  ;;  %v735_v37 = vld [vmem:[%s2264_s3 + $0x20] sm:$0xff]  ;;  %vm1114_vm8 = vcmask 253952  }
 0x5d8   : > { %641 = vadd.xlane.f32.xlu2 %v640_v38  ;;  %v751_v38 = vld [vmem:[%s2264_s3 + $0xa0] sm:$0xff] }
 0x5d9   : > { %944 = vmatpush.msrb.mxu1 %v751_v38  ;;  %v838_v38 = vld [vmem:[%s2264_s3 + $0x358] sm:$0xff] }
 0x5db   : > { %945 = vmatpush.msrb.mxu1 %v750_v45  ;;  %v800_v45 = vld [vmem:[%s2264_s3 + $0x228] sm:$0xff] }
 0x643   : > { %v639_v39 = vpop.xlane.xlu0 %638 }
 0x644   : > { %v643_v40 = vmul.f32 %v639_v39, %v1587_v8  ;;  %v771_v39 = vld [vmem:[%s2264_s3 + $0x140] sm:$0xff] }
 0x646   : > { %v1660_v41 = vadd.f32 1e-05, %v643_v40 }
 0x648   : > { %1315 = vrsqrt.f32 %v1660_v41  ;;  %vm653_vm2 = vweird.f32 %v1660_v41 }
 0x64b   : > { %v642_v46 = vpop.xlane.xlu2 %641 }
 0x64c   : > { %v644_v49 = vmul.f32 %v642_v46, %v1587_v8  ;;  %v742_v8 = vld [vmem:[%s2264_s3 + $0x58] sm:$0xff] }
 0x64d   : > { %917 = vmatpush.msrb.mxu0 %v742_v8 }
 0x64e   : > { %v1688_v52 = vpop.eup %1315  ;;  %v1690_v53 = vadd.f32 1e-05, %v644_v49  ;;  %v733_v49 = vld [vmem:[%s2264_s3 + $0x10] sm:$0xff] }
 0x64f   : > { %v648_v54 = vmul.f32 %v1688_v52, %v1660_v41  ;;  %918 = vmatpush.msrb.mxu0 %v741_v59  ;;  %vm654_vm0 = vweird.f32 %v1688_v52  ;;  %v787_v41 = vld [vmem:[%s2264_s3 + $0x1c0] sm:$0xff] }
 0x650   : > { %1317 = vrsqrt.f32 %v1690_v53  ;;  %vm655_vm3 = vmor %vm653_vm2, %vm654_vm0  ;;  %vm663_vm6 = vweird.f32 %v1690_v53  ;;  %980 = vmatpush.msrb.mxu3 %v787_v41  ;;  %v817_v41 = vld [vmem:[%s2264_s3 + $0x2b0] sm:$0xff] }
 0x651   : > { %v649_v58 = vmul.f32 %v1688_v52, %v648_v54  ;;  %919 = vmatpush.msrb.mxu0 %v740_v0  ;;  %v748_v54 = vld [vmem:[%s2264_s3 + $0x88] sm:$0xff]  ;;  %v782_v0 = vld [vmem:[%s2264_s3 + $0x198] sm:$0xff] }
 0x652   : > { %981 = vmatpush.msrb.mxu3 %v786_v47 }
 0x653   : > { %v650_v63 = vmul.f32 0.5, %v649_v58  ;;  %920 = vmatpush.msrb.mxu0 %v739_v5  ;;  %v767_v58 = vld [vmem:[%s2264_s3 + $0x120] sm:$0xff] }
 0x655   : > { %v651_v4 = vsub.f32 1.5, %v650_v63  ;;  %921 = vmatpush.msrb.mxu0 %v738_v14  ;;  %v766_v63 = vld [vmem:[%s2264_s3 + $0x118] sm:$0xff]  ;;  %v763_v14 = vld [vmem:[%s2264_s3 + $0x100] sm:$0xff] }
 0x656   : > { %v1742_v10 = vpop.eup %1317 }
 0x657   : > { %v652_v12 = vmul.f32 %v1688_v52, %v651_v4  ;;  %v658_v13 = vmul.f32 %v1742_v10, %v1690_v53  ;;  %922 = vmatpush.msrb.mxu0 %v737_v22  ;;  %vm664_vm4 = vweird.f32 %v1742_v10  ;;  %v732_v53 = vld [vmem:[%s2264_s3 + $0x8] sm:$0xff]  ;;  %v765_v4 = vld [vmem:[%s2264_s3 + $0x110] sm:$0xff] }
 0x658   : > { %vm665_vm7 = vmor %vm663_vm6, %vm664_vm4  ;;  %v821_v22 = vld [vmem:[%s2264_s3 + $0x2d0] sm:$0xff] }
 0x659   : > { %v656_v19 = vsel %vm655_vm3, %v1688_v52, %v652_v12  ;;  %v659_v21 = vmul.f32 %v1742_v10, %v658_v13  ;;  %923 = vmatpush.msrb.mxu0 %v736_v30  ;;  %v785_v52 = vld [vmem:[%s2264_s3 + $0x1b0] sm:$0xff]  ;;  %v807_v12 = vld [vmem:[%s2264_s3 + $0x260] sm:$0xff]  ;;  %v856_v30 = vld [vmem:[%s2264_s3 + $0x3e8] sm:$0xff] }
 0x65a   : > { %v667_v9 = vmul.f32 %v656_v19, %v1648_v31  ;;  %v772_v31 = vld [vmem:[%s2264_s3 + $0x148] sm:$0xff]  ;;  %982 = vmatpush.msrb.mxu3 %v785_v52  ;;  %v823_v13 = vld [vmem:[%s2264_s3 + $0x2e0] sm:$0xff]  ;;  %v858_v19 = vld [vmem:[%s2264_s3 + $0x3f8] sm:$0xff] }
 0x65b   : > { %v660_v29 = vmul.f32 0.5, %v659_v21  ;;  %959 = vmatpush.msrb.mxu2 %v772_v31  ;;  %924 = vmatpush.msrb.mxu0 %v735_v37  ;;  %v805_v21 = vld [vmem:[%s2264_s3 + $0x250] sm:$0xff]  ;;  %v819_v31 = vld [vmem:[%s2264_s3 + $0x2c0] sm:$0xff]  ;;  %v818_v37 = vld [vmem:[%s2264_s3 + $0x2b8] sm:$0xff] }
 0x65c   : > { %v670_v33 = vmul.f32 %v1763_v17, %v667_v9  ;;  %983 = vmatpush.msrb.mxu3 %v784_v55  ;;  %v804_v9 = vld [vmem:[%s2264_s3 + $0x248] sm:$0xff]  ;;  %v851_v52 = vld [vmem:[%s2264_s3 + $0x3c0] sm:$0xff]  ;;  %v797_v55 = vld [vmem:[%s2264_s3 + $0x210] sm:$0xff] }
 0x65d   : > { %v661_v35 = vsub.f32 1.5, %v660_v29  ;;  %960 = vmatpush.msrb.mxu2 %v771_v39  ;;  %925 = vmatpush.msrb.mxu0 %v734_v44  ;;  %v840_v29 = vld [vmem:[%s2264_s3 + $0x368] sm:$0xff]  ;;  %v854_v39 = vld [vmem:[%s2264_s3 + $0x3d8] sm:$0xff]  ;;  %v853_v44 = vld [vmem:[%s2264_s3 + $0x3d0] sm:$0xff] }
 0x65e   : > { %v673_v40 = vadd.f32 %v1784_v27, %v670_v33  ;;  %984 = vmatpush.msrb.mxu3 %v783_v60  ;;  %v839_v33 = vld [vmem:[%s2264_s3 + $0x360] sm:$0xff]  ;;  %v812_v60 = vld [vmem:[%s2264_s3 + $0x288] sm:$0xff] }
 0x65f   : > { %v662_v43 = vmul.f32 %v1742_v10, %v661_v35  ;;  %961 = vmatpush.msrb.mxu2 %v770_v20  ;;  %926 = vmatpush.msrb.mxu0 %v733_v49  ;;  %v802_v35 = vld [vmem:[%s2264_s3 + $0x238] sm:$0xff]  ;;  %v816_v20 = vld [vmem:[%s2264_s3 + $0x2a8] sm:$0xff] }
 0x660   : > { %v1834_v46 = vmul.f32 %v1528_v25, %v673_v40  ;;  %v749_v25 = vld [vmem:[%s2264_s3 + $0x90] sm:$0xff]  ;;  %985 = vmatpush.msrb.mxu3 %v782_v0  ;;  %v852_v49 = vld [vmem:[%s2264_s3 + $0x3c8] sm:$0xff]  ;;  %v795_v0 = vld [vmem:[%s2264_s3 + $0x200] sm:$0xff] }
 0x661   : > { %v666_v48 = vsel %vm665_vm7, %v1742_v10, %v662_v43  ;;  %946 = vmatpush.msrb.mxu1 %v749_v25  ;;  %962 = vmatpush.msrb.mxu2 %v769_v50  ;;  %v764_v10 = vld [vmem:[%s2264_s3 + $0x108] sm:$0xff]  ;;  %v801_v40 = vld [vmem:[%s2264_s3 + $0x230] sm:$0xff]  ;;  %v799_v25 = vld [vmem:[%s2264_s3 + $0x220] sm:$0xff] }
 0x662   : > { %685 = vst.msk [vmem:[#allocation2] sm:$0x1] %vm1818_vm5, %v1834_v46  ;;  %v668_v51 = vmul.f32 %v666_v48, %v1654_v36  ;;  %v768_v36 = vld [vmem:[%s2264_s3 + $0x128] sm:$0xff]  ;;  %927 = vmatpush.msrb.mxu0 %v732_v53  ;;  %v837_v43 = vld [vmem:[%s2264_s3 + $0x350] sm:$0xff]  ;;  %v815_v50 = vld [vmem:[%s2264_s3 + $0x2a0] sm:$0xff] }
 0x663   : > { %687 = vst [vmem:[#allocation1] sm:$0xff] %v1834_v46  ;;  %947 = vmatpush.msrb.mxu1 %v748_v54  ;;  %963 = vmatpush.msrb.mxu2 %v768_v36  ;;  %v836_v48 = vld [vmem:[%s2264_s3 + $0x348] sm:$0xff]  ;;  %v798_v53 = vld [vmem:[%s2264_s3 + $0x218] sm:$0xff] }
 0x664   : > { %v671_v8 = vmul.f32 %v1763_v17, %v668_v51  ;;  %928 = vmatpush.msrb.mxu0 %v731_v56  ;;  %v822_v17 = vld [vmem:[%s2264_s3 + $0x2d8] sm:$0xff]  ;;  %v835_v51 = vld [vmem:[%s2264_s3 + $0x340] sm:$0xff]  ;;  %v813_v56 = vld [vmem:[%s2264_s3 + $0x290] sm:$0xff] }
 0x665   : > { %948 = vmatpush.msrb.mxu1 %v747_v57  ;;  %964 = vmatpush.msrb.mxu2 %v767_v58  ;;  %v814_v54 = vld [vmem:[%s2264_s3 + $0x298] sm:$0xff]  ;;  %v833_v57 = vld [vmem:[%s2264_s3 + $0x330] sm:$0xff] }
 0x666   : > { %v674_v59 = vadd.f32 %v1784_v27, %v671_v8  ;;  %993 = vmatpush.msra.mxu0 %v810_v61  ;;  %v834_v36 = vld [vmem:[%s2264_s3 + $0x338] sm:$0xff]  ;;  %v849_v58 = vld [vmem:[%s2264_s3 + $0x3b0] sm:$0xff] }
 0x667   : > { %1013 = vmatpush.msra.mxu1 %v826_v62  ;;  %965 = vmatpush.msrb.mxu2 %v766_v63  ;;  %v850_v8 = vld [vmem:[%s2264_s3 + $0x3b8] sm:$0xff]  ;;  %v832_v62 = vld [vmem:[%s2264_s3 + $0x328] sm:$0xff] }
 0x668   : > { %v1898_v1 = vmul.f32 %v1531_v26, %v674_v59  ;;  %v781_v26 = vld [vmem:[%s2264_s3 + $0x190] sm:$0xff]  ;;  %994 = vmatpush.msra.mxu0 %v809_v2  ;;  %v796_v59 = vld [vmem:[%s2264_s3 + $0x208] sm:$0xff]  ;;  %v811_v2 = vld [vmem:[%s2264_s3 + $0x280] sm:$0xff] }
 0x669   : > { %1014 = vmatpush.msra.mxu1 %v825_v3  ;;  %966 = vmatpush.msrb.mxu2 %v765_v4  ;;  %v848_v63 = vld [vmem:[%s2264_s3 + $0x3a8] sm:$0xff]  ;;  %v831_v3 = vld [vmem:[%s2264_s3 + $0x320] sm:$0xff] }
 0x66a   : > { %v689_v5 = vld [vmem:[#allocation1 + $0x1] ss:$9 sm:$0xff]  ;;  %722 = vst.msk [vmem:[#allocation2 + $0x8] sm:$0x1] %vm1818_vm5, %v1898_v1  ;;  %986 = vmatpush.msrb.mxu3 %v781_v26  ;;  %995 = vmatpush.msra.mxu0 %v808_v6 }
 0x66b   : > { %692 = vst [vmem:[#allocation1] sm:$0xff] %v1834_v46  ;;  %1015 = vmatpush.msra.mxu1 %v824_v7  ;;  %967 = vmatpush.msrb.mxu2 %v764_v10  ;;  %v847_v4 = vld [vmem:[%s2264_s3 + $0x3a0] sm:$0xff]  ;;  %v830_v26 = vld [vmem:[%s2264_s3 + $0x318] sm:$0xff]  ;;  %v829_v6 = vld [vmem:[%s2264_s3 + $0x310] sm:$0xff] }
 0x66c   : > { %691 = vst.msk [vmem:[#allocation2 + $0x1] sm:$0x1] %vm1818_vm5, %v689_v5  ;;  %987 = vmatpush.msrb.mxu3 %v780_v11  ;;  %996 = vmatpush.msra.mxu0 %v807_v12  ;;  %v846_v5 = vld [vmem:[%s2264_s3 + $0x398] sm:$0xff]  ;;  %v845_v7 = vld [vmem:[%s2264_s3 + $0x390] sm:$0xff]  ;;  %v828_v11 = vld [vmem:[%s2264_s3 + $0x308] sm:$0xff] }
 0x66d   : > { %1016 = vmatpush.msra.mxu1 %v823_v13  ;;  %968 = vmatpush.msrb.mxu2 %v763_v14  ;;  %v844_v12 = vld [vmem:[%s2264_s3 + $0x388] sm:$0xff]  ;;  %v827_v13 = vld [vmem:[%s2264_s3 + $0x300] sm:$0xff] }
 0x66e   : > { %988 = vmatpush.msrb.mxu3 %v779_v15  ;;  %997 = vmatpush.msra.mxu0 %v806_v16  ;;  %v843_v14 = vld [vmem:[%s2264_s3 + $0x380] sm:$0xff] }
 0x66f   : > { %1017 = vmatpush.msra.mxu1 %v822_v17  ;;  %1033 = vmatpush.msra.mxu2 %v842_v18 }
 0x670   : > { %1053 = vmatpush.msra.mxu3 %v858_v19  ;;  %998 = vmatpush.msra.mxu0 %v805_v21 }
 0x671   : > { %1018 = vmatpush.msra.mxu1 %v821_v22  ;;  %1034 = vmatpush.msra.mxu2 %v841_v23  ;;  %v874_v23 = vld [vmem:[%s2264_s3 + $0x478] sm:$0xff] }
 0x672   : > { %v694_v27 = vld [vmem:[#allocation1 + $0x2] ss:$9 sm:$0xff]  ;;  %1054 = vmatpush.msra.mxu3 %v857_v24  ;;  %999 = vmatpush.msra.mxu0 %v804_v9 }
 0x673   : > { %697 = vst [vmem:[#allocation1] sm:$0xff] %v1834_v46  ;;  %1019 = vmatpush.msra.mxu1 %v820_v28  ;;  %1035 = vmatpush.msra.mxu2 %v840_v29  ;;  %v872_v9 = vld [vmem:[%s2264_s3 + $0x468] sm:$0xff]  ;;  %v871_v29 = vld [vmem:[%s2264_s3 + $0x460] sm:$0xff] }
 0x674   : > { %696 = vst.msk [vmem:[#allocation2 + $0x2] sm:$0x1] %vm1818_vm5, %v694_v27  ;;  %1055 = vmatpush.msra.mxu3 %v856_v30  ;;  %1000 = vmatpush.msra.mxu0 %v803_v32  ;;  %v889_v27 = vld [vmem:[%s2264_s3 + $0x4f0] sm:$0xff]  ;;  %v888_v28 = vld [vmem:[%s2264_s3 + $0x4e8] sm:$0xff] }
 0x675   : > { %1020 = vmatpush.msra.mxu1 %v819_v31  ;;  %1036 = vmatpush.msra.mxu2 %v839_v33 }
 0x676   : > { %1056 = vmatpush.msra.mxu3 %v855_v34  ;;  %1001 = vmatpush.msra.mxu0 %v802_v35  ;;  %v870_v34 = vld [vmem:[%s2264_s3 + $0x458] sm:$0xff] }
 0x677   : > { %1021 = vmatpush.msra.mxu1 %v818_v37  ;;  %1037 = vmatpush.msra.mxu2 %v838_v38  ;;  %v886_v35 = vld [vmem:[%s2264_s3 + $0x4d8] sm:$0xff]  ;;  %v869_v37 = vld [vmem:[%s2264_s3 + $0x450] sm:$0xff] }
 0x678   : > { %1057 = vmatpush.msra.mxu3 %v854_v39  ;;  %1002 = vmatpush.msra.mxu0 %v801_v40  ;;  %v885_v38 = vld [vmem:[%s2264_s3 + $0x4d0] sm:$0xff]  ;;  %v868_v39 = vld [vmem:[%s2264_s3 + $0x448] sm:$0xff] }
 0x679   : > { %1022 = vmatpush.msra.mxu1 %v817_v41  ;;  %1038 = vmatpush.msra.mxu2 %v837_v43  ;;  %v884_v40 = vld [vmem:[%s2264_s3 + $0x4c8] sm:$0xff]  ;;  %v867_v41 = vld [vmem:[%s2264_s3 + $0x440] sm:$0xff] }
 0x67a   : > { %v699_v47 = vld [vmem:[#allocation1 + $0x3] ss:$9 sm:$0xff]  ;;  %1058 = vmatpush.msra.mxu3 %v853_v44  ;;  %1003 = vmatpush.msra.mxu0 %v800_v45 }
 0x67b   : > { %702 = vst [vmem:[#allocation1] sm:$0xff] %v1834_v46  ;;  %1023 = vmatpush.msra.mxu1 %v816_v20  ;;  %1039 = vmatpush.msra.mxu2 %v836_v48  ;;  %v883_v43 = vld [vmem:[%s2264_s3 + $0x4c0] sm:$0xff]  ;;  %v866_v44 = vld [vmem:[%s2264_s3 + $0x438] sm:$0xff]  ;;  %v865_v20 = vld [vmem:[%s2264_s3 + $0x430] sm:$0xff] }
 0x67c   : > { %701 = vst.msk [vmem:[#allocation2 + $0x3] sm:$0x1] %vm1818_vm5, %v699_v47  ;;  %1059 = vmatpush.msra.mxu3 %v852_v49  ;;  %1004 = vmatpush.msra.mxu0 %v799_v25  ;;  %v882_v45 = vld [vmem:[%s2264_s3 + $0x4b8] sm:$0xff]  ;;  %v881_v47 = vld [vmem:[%s2264_s3 + $0x4b0] sm:$0xff]  ;;  %v864_v48 = vld [vmem:[%s2264_s3 + $0x428] sm:$0xff] }
 0x67d   : > { %1024 = vmatpush.msra.mxu1 %v815_v50  ;;  %1040 = vmatpush.msra.mxu2 %v835_v51  ;;  %v880_v49 = vld [vmem:[%s2264_s3 + $0x4a8] sm:$0xff]  ;;  %v863_v25 = vld [vmem:[%s2264_s3 + $0x420] sm:$0xff]  ;;  %v862_v51 = vld [vmem:[%s2264_s3 + $0x418] sm:$0xff] }
 0x67e   : > { %1060 = vmatpush.msra.mxu3 %v851_v52  ;;  %1005 = vmatpush.msra.mxu0 %v798_v53  ;;  %v879_v50 = vld [vmem:[%s2264_s3 + $0x4a0] sm:$0xff]  ;;  %v878_v52 = vld [vmem:[%s2264_s3 + $0x498] sm:$0xff]  ;;  %v861_v53 = vld [vmem:[%s2264_s3 + $0x410] sm:$0xff] }
 0x67f   : > { %1025 = vmatpush.msra.mxu1 %v814_v54  ;;  %1041 = vmatpush.msra.mxu2 %v834_v36  ;;  %v877_v54 = vld [vmem:[%s2264_s3 + $0x490] sm:$0xff]  ;;  %v860_v36 = vld [vmem:[%s2264_s3 + $0x408] sm:$0xff] }
 0x680   : > { %1061 = vmatpush.msra.mxu3 %v850_v8  ;;  %1006 = vmatpush.msra.mxu0 %v797_v55  ;;  %v876_v8 = vld [vmem:[%s2264_s3 + $0x488] sm:$0xff] }
 0x681   : > { %1026 = vmatpush.msra.mxu1 %v813_v56  ;;  %1042 = vmatpush.msra.mxu2 %v833_v57  ;;  %v859_v56 = vld [vmem:[%s2264_s3 + $0x400] sm:$0xff] }
 0x682   : > { %v704_v61 = vld [vmem:[#allocation1 + $0x4] ss:$9 sm:$0xff]  ;;  %1062 = vmatpush.msra.mxu3 %v849_v58  ;;  %1007 = vmatpush.msra.mxu0 %v796_v59 }
 0x683   : > { %707 = vst [vmem:[#allocation1] sm:$0xff] %v1834_v46  ;;  %1027 = vmatpush.msra.mxu1 %v812_v60  ;;  %1043 = vmatpush.msra.mxu2 %v832_v62  ;;  %v875_v57 = vld [vmem:[%s2264_s3 + $0x480] sm:$0xff]  ;;  %v292_v60 = vld [vmem:[%s2265_s4 + $0xa] sm:$0x1] }
 0x684   : > { %706 = vst.msk [vmem:[#allocation2 + $0x4] sm:$0x1] %vm1818_vm5, %v704_v61  ;;  %1063 = vmatpush.msra.mxu3 %v848_v63  ;;  %1008 = vmatpush.msra.mxu0 %v795_v0 }
 0x685   : > { %1028 = vmatpush.msra.mxu1 %v811_v2  ;;  %1044 = vmatpush.msra.mxu2 %v831_v3 }
 0x686   : > { %1064 = vmatpush.msra.mxu3 %v847_v4 }
 0x687   : > { %1045 = vmatpush.msra.mxu2 %v830_v26 }
 0x688   : > { %1065 = vmatpush.msra.mxu3 %v846_v5 }
 0x689   : > { %1046 = vmatpush.msra.mxu2 %v829_v6 }
 0x68a   : > { %v709_v10 = vld [vmem:[#allocation1 + $0x5] ss:$9 sm:$0xff]  ;;  %1066 = vmatpush.msra.mxu3 %v845_v7 }
 0x68b   : > { %712 = vst [vmem:[#allocation1] sm:$0xff] %v1834_v46  ;;  %1047 = vmatpush.msra.mxu2 %v828_v11 }
 0x68c   : > { %711 = vst.msk [vmem:[#allocation2 + $0x5] sm:$0x1] %vm1818_vm5, %v709_v10  ;;  %1067 = vmatpush.msra.mxu3 %v844_v12 }
 0x68d   : > { %1048 = vmatpush.msra.mxu2 %v827_v13 }
 0x68e   : > { %1068 = vmatpush.msra.mxu3 %v843_v14 }
 0x692   : > { %v714_v15 = vld [vmem:[#allocation1 + $0x6] ss:$9 sm:$0xff] }
 0x693   : > { %717 = vst [vmem:[#allocation1] sm:$0xff] %v1834_v46  ;;  %v890_v46 = vld [vmem:[%s2264_s3 + $0x4f8] sm:$0xff] }
 0x694   : > { %716 = vst.msk [vmem:[#allocation2 + $0x6] sm:$0x1] %vm1818_vm5, %v714_v15 }
 0x69a   : > { %v719_v16 = vld [vmem:[#allocation1 + $0x7] ss:$9 sm:$0xff] }
 0x69b   : > { %721 = vst.msk [vmem:[#allocation2 + $0x7] sm:$0x1] %vm1818_vm5, %v719_v16 }
 0x69c   : > { %724 = vst [vmem:[#allocation1] sm:$0xff] %v1898_v1  ;;  %v873_v1 = vld [vmem:[%s2264_s3 + $0x470] sm:$0xff] }
 0x6a2   : > { %v729_v17 = vld [vmem:[#allocation2] sm:$0xff] }
 0x6a3   : > { %v893_v18 = vperm.slane %v729_v17, 0  ;;  %v894_v19 = vperm.slane %v729_v17, 1  ;;  %v895_v21 = vperm.slane %v729_v17, 2  ;;  %v896_v22 = vperm.slane %v729_v17, 3  ;;  %v726_v24 = vld [vmem:[#allocation1 + $0x1] ss:$9 sm:$0xff] }
 0x6a4   : > { %728 = vst.msk [vmem:[#allocation2 + $0x9] sm:$0x1] %vm1818_vm5, %v726_v24  ;;  %v897_v30 = vperm.slane %v729_v17, 4  ;;  %v898_v32 = vperm.slane %v729_v17, 5  ;;  %v899_v31 = vperm.slane %v729_v17, 6  ;;  %v900_v33 = vperm.slane %v729_v17, 7 }
 0x6a5   : > { %929 = vmatmul.f32.vlgmr.msrb.gmra.mxu0 %v893_v18  ;;  %949 = vmatmul.f32.vlgmr.msrb.gmra.mxu1 %v894_v19 }
 0x6a6   : > { %969 = vmatmul.f32.vlgmr.msrb.gmra.mxu2 %v895_v21  ;;  %989 = vmatmul.f32.vlgmr.msrb.gmra.mxu3 %v896_v22 }
 0x6a7   : > { %1073 = vmatpush.msrb.mxu0 %v874_v23  ;;  %1093 = vmatpush.msrb.mxu1 %v890_v46 }
 0x6a9   : > { %1074 = vmatpush.msrb.mxu0 %v873_v1  ;;  %1094 = vmatpush.msrb.mxu1 %v889_v27 }
 0x6ab   : > { %1075 = vmatpush.msrb.mxu0 %v872_v9  ;;  %1095 = vmatpush.msrb.mxu1 %v888_v28  ;;  %v730_v55 = vld [vmem:[#allocation2 + $0x8] sm:$0x3] }
 0x6ac   : > { %v901_v58 = vperm.slane %v730_v55, 0  ;;  %v902_v59 = vperm.slane %v730_v55, 1 }
 0x6ad   : > { %1076 = vmatpush.msrb.mxu0 %v871_v29  ;;  %1096 = vmatpush.msrb.mxu1 %v887_v42 }
 0x6ae   : > { %1009 = vmatmul.f32.vlgmr.msra.gmra.mxu0 %v897_v30  ;;  %1029 = vmatmul.f32.vlgmr.msra.gmra.mxu1 %v898_v32 }
 0x6af   : > { %1049 = vmatmul.f32.vlgmr.msra.gmra.mxu2 %v899_v31  ;;  %1069 = vmatmul.f32.vlgmr.msra.gmra.mxu3 %v900_v33 }
 0x6b0   : > { %1077 = vmatpush.msrb.mxu0 %v870_v34  ;;  %1097 = vmatpush.msrb.mxu1 %v886_v35 }
 0x6b2   : > { %1078 = vmatpush.msrb.mxu0 %v869_v37  ;;  %1098 = vmatpush.msrb.mxu1 %v885_v38 }
 0x6b4   : > { %1079 = vmatpush.msrb.mxu0 %v868_v39  ;;  %1099 = vmatpush.msrb.mxu1 %v884_v40 }
 0x6b6   : > { %1080 = vmatpush.msrb.mxu0 %v867_v41  ;;  %1100 = vmatpush.msrb.mxu1 %v883_v43 }
 0x6b8   : > { %1081 = vmatpush.msrb.mxu0 %v866_v44  ;;  %1101 = vmatpush.msrb.mxu1 %v882_v45 }
 0x6ba   : > { %1082 = vmatpush.msrb.mxu0 %v865_v20  ;;  %1102 = vmatpush.msrb.mxu1 %v881_v47 }
 0x6bc   : > { %1083 = vmatpush.msrb.mxu0 %v864_v48  ;;  %1103 = vmatpush.msrb.mxu1 %v880_v49 }
 0x6be   : > { %1084 = vmatpush.msrb.mxu0 %v863_v25  ;;  %1104 = vmatpush.msrb.mxu1 %v879_v50 }
 0x6c0   : > { %1085 = vmatpush.msrb.mxu0 %v862_v51  ;;  %1105 = vmatpush.msrb.mxu1 %v878_v52 }
 0x6c2   : > { %1086 = vmatpush.msrb.mxu0 %v861_v53  ;;  %1106 = vmatpush.msrb.mxu1 %v877_v54 }
 0x6c4   : > { %1087 = vmatpush.msrb.mxu0 %v860_v36  ;;  %1107 = vmatpush.msrb.mxu1 %v876_v8 }
 0x6c6   : > { %1088 = vmatpush.msrb.mxu0 %v859_v56  ;;  %1108 = vmatpush.msrb.mxu1 %v875_v57 }
 0x6c7   : > { %1089 = vmatmul.f32.vlgmr.msrb.gmra.mxu0 %v901_v58  ;;  %1109 = vmatmul.f32.vlgmr.msrb.gmra.mxu1 %v902_v59 }
 0x722   : > { %v930_v61 = vpop.f32.mrf.mxu0  ;;  %v950_v63 = vpop.f32.mrf.mxu1 }
 0x723   : > { %v931_v62 = vadd.f32 %v930_v61, %v292_v60 }
 0x725   : > { %v951_v2 = vadd.f32 %v950_v63, %v931_v62 }
 0x729   : > { %v970_v0 = vpop.f32.mrf.mxu2  ;;  %v990_v4 = vpop.f32.mrf.mxu3 }
 0x72a   : > { %v971_v3 = vadd.f32 %v970_v0, %v951_v2 }
 0x72b   : > { %v1010_v5 = vpop.f32.mrf.mxu0  ;;  %v1030_v7 = vpop.f32.mrf.mxu1 }
 0x72c   : > { %v991_v26 = vadd.f32 %v990_v4, %v971_v3 }
 0x72e   : > { %v1011_v6 = vadd.f32 %v1010_v5, %v991_v26 }
 0x730   : > { %v1031_v10 = vadd.f32 %v1030_v7, %v1011_v6 }
 0x732   : > { %v1050_v11 = vpop.f32.mrf.mxu2  ;;  %v1070_v13 = vpop.f32.mrf.mxu3 }
 0x733   : > { %v1051_v12 = vadd.f32 %v1050_v11, %v1031_v10 }
 0x735   : > { %v1071_v14 = vadd.f32 %v1070_v13, %v1051_v12 }
 0x744   : > { %v1090_v15 = vpop.f32.mrf.mxu0  ;;  %v1110_v17 = vpop.f32.mrf.mxu1 }
 0x745   : > { %v1091_v16 = vadd.f32 %v1090_v15, %v1071_v14 }
 0x747   : > { %v1111_v18 = vadd.f32 %v1110_v17, %v1091_v16 }
 0x749   : > { %v1113_v19 = vmax.f32 %v1111_v18, 0.0 }
 0x74b   : > { %1115 = vst.msk [vmem:[%s219_s29] sm:$0x1] %vm1114_vm8, %v1113_v19 }
 0x74c   : > { %1346 = shalt.err (!%p1343_p3)
}
 0x74d   : > { %1250 = dma.vmem_to_hbm [thread:$0]  (%p1461_p5), %s1133_s10, 16, %s1135_s11, %s1117_s12  }
 0x74e PF: > { %p1256_p4 = scmp.ge.s32.totalorder %s1381_s26, 2  ;;  %s1149_s17 = sand.u32 1, %s1369_s23  }
 0x74f   : > { %s1150_s18 = scalar_lea.sflag [#allocation6], %s1149_s17 }
 0x750   : > { %p1253_p7 = pnand %p1256_p4, %p1465_p6 }
 0x752   : > { %p1254_p8 = pneg %p1253_p7 }
 0x754   : > { %1364 = dma.done.wait (%p1254_p8), %s1150_s18, 16  }
 0x755   : > { %1366 = vsyncadd (%p1254_p8), %s1150_s18, 4294967280  ;;  %p18_p9 = scmp.ge.s32.totalorder %s1448_s28, 4   ;;  %s2272_s23 = smov %s1373_s24 }
 0x756   : > { %s2273_s24 = smov %s1377_s25  ;;  %s2274_s25 = smov %s1459_s7 }
 0x757   : > { %s2275_s26 = smov %s1448_s28  ;;  %20 = sbr.rel (!%p18_p9) target bundleno = 5 (0x5), region = 91 }
 0x75c   :  { %1163 = vsyncpa [#allocation6], 1 }
 0x75d   :  { %1165 = vsyncpa [#allocation6 + $0x1], 1 }

</bundles_post_ra>
